<compile_context>
chip_gen: v6e
topology: v6e:2x2x1
jax: 0.10.0
libtpu: 0.0.40
codegen_flags: <defaults>
</compile_context>

<pallas_src>
import functools

import jax
import jax.numpy as jnp
from jax import lax
from jax.experimental import pallas as pl
from jax.experimental.pallas import tpu as pltpu


# ---------------------------------------------------------------------------
# Pallas kernel: one (batch-block, T-chunk) tile of the LSTM rollout + head.
# ---------------------------------------------------------------------------
def _lstm_head_kernel(xin_ref,    # (Bb, Tc, D)   batch-major input chunk
                      h0_ref,     # (Bb, H)       initial hidden state
                      c0_ref,     # (Bb, H)       initial cell state
                      wih_ref,    # (D, 4H)       == weight_ih_l0.T
                      whh_ref,    # (H, 4H)       == weight_hh_l0.T
                      b_ref,      # (1, 4H)       bias_ih + bias_hh
                      whd_ref,    # (H, obs)      == head Linear.weight.T
                      bhd_ref,    # (1, obs)
                      gamma_ref,  # (1, obs)      LayerNorm weight
                      beta_ref,   # (1, obs)      LayerNorm bias
                      out_ref,    # (Bb, Tc, obs) output chunk
                      hT_ref,     # (Bb, H)       resident carry / final h
                      cT_ref,     # (Bb, H)       resident carry / final c
                      gates_ref,  # VMEM (Bb, Tc, 4H) f32: staged input projection
                      hs_ref,     # VMEM (Bb, Tc, H)  f32: per-step h (fori path)
                      *, max_unroll):
    Bb, H = h0_ref.shape
    Tc = xin_ref.shape[1]
    obs = out_ref.shape[2]

    # First T-chunk for this batch block: seed the resident carry from the
    # provided initial state.  On later T-chunks hT/cT still hold the carry
    # (their block index only depends on the batch axis, so the block stays
    # resident in VMEM across the whole "arbitrary" T sweep).
    @pl.when(pl.program_id(1) == 0)
    def _():
        hT_ref[...] = h0_ref[...]
        cT_ref[...] = c0_ref[...]

    whh = whh_ref[...]
    mx_dtype = whh.dtype  # f32, or bf16 when use_bf16_mxu=True

    # (1) Input projection for ALL timesteps of the chunk: one MXU pass,
    #     staged into VMEM scratch so no (Bb*Tc, 4H) value lives across the
    #     serial recurrence (spill-proof for large chunks).
    xin = xin_ref[...]
    gx = (jnp.dot(xin.reshape(Bb * Tc, -1), wih_ref[...],
                  preferred_element_type=jnp.float32)
          + b_ref[...])                                    # (Bb*Tc, 4H) f32
    gates_ref[...] = gx.reshape(Bb, Tc, 4 * H)

    h = hT_ref[...]      # f32 state
    c = cT_ref[...]

    def cell(gx_t, h, c):
        # Per-step recurrent matmul (small LHS: Bb rows).
        g = gx_t + jnp.dot(h.astype(mx_dtype), whh,
                           preferred_element_type=jnp.float32)     # (Bb, 4H)
        # Batched nonlinearities: one sigmoid pass (i,f,o) + one tanh pass (g)
        # over the full (Bb, 4H) tile, then lane slices for the combine.
        sg = jax.nn.sigmoid(g)
        tg = jnp.tanh(g)
        i_g = sg[:, 0 * H:1 * H]
        f_g = sg[:, 1 * H:2 * H]
        g_g = tg[:, 2 * H:3 * H]
        o_g = sg[:, 3 * H:4 * H]
        c = f_g * c + i_g * g_g
        h = o_g * jnp.tanh(c)
        return h, c

    # (2) Recurrence.
    if Tc <= max_unroll:
        # Small chunk: fully unrolled, hidden states collected in registers
        # (no masked sub-sublane VMEM stores, no reload).
        hts = []
        for t in range(Tc):
            h, c = cell(gates_ref[:, t, :], h, c)
            hts.append(h)
        hs = jnp.stack(hts, axis=1)                        # (Bb, Tc, H) f32
    else:
        # Large chunk: bounded-unroll fori_loop + VMEM hidden-state scratch.
        def body(t, carry):
            h_c, c_c = carry
            gx_t = gates_ref[:, pl.ds(t, 1), :].reshape(Bb, 4 * H)
            h_c, c_c = cell(gx_t, h_c, c_c)
            hs_ref[:, pl.ds(t, 1), :] = h_c[:, None, :]
            return (h_c, c_c)
        h, c = lax.fori_loop(0, Tc, body, (h, c), unroll=4)
        hs = hs_ref[...]                                   # (Bb, Tc, H) f32

    hT_ref[...] = h
    cT_ref[...] = c

    # (3) Head hoisted out of the recurrence: one matmul + LayerNorm + tanh
    #     over all timesteps of the chunk, one store to the output block.
    #     (out last dim == obs == full array dim; padding it to 128 lanes
    #     would trade the masked store for ~10x HBM write amplification.)
    y = (jnp.dot(hs.reshape(Bb * Tc, H).astype(mx_dtype), whd_ref[...],
                 preferred_element_type=jnp.float32) + bhd_ref[...])
    mu = jnp.mean(y, axis=-1, keepdims=True)
    var = jnp.mean((y - mu) * (y - mu), axis=-1, keepdims=True)
    yn = (y - mu) * lax.rsqrt(var + jnp.float32(1e-5)) * gamma_ref[...] + beta_ref[...]
    out_ref[...] = jnp.tanh(yn).reshape(Bb, Tc, obs).astype(out_ref.dtype)


# ---------------------------------------------------------------------------
# pallas_call wrapper
# ---------------------------------------------------------------------------
def _run_kernel(xin, h0, c0, params, *, t_chunk, batch_block, mxu_dtype,
                max_unroll, vmem_limit_bytes):
    B, T, D = xin.shape
    H = h0.shape[-1]
    obs = params["w_head"].shape[-1]
    Bb, Tc = batch_block, t_chunk

    # (8,128) block legality: the second-minor block dims must be multiples of
    # 8 or equal the full array dim; the lane dims (D, obs, H) equal full dims.
    assert T % Tc == 0 and (Tc % 8 == 0 or Tc == T), "bad t_chunk"
    assert B % Bb == 0 and (Bb == B or Bb % 8 == 0), "bad batch_block"

    # bf16 only for MXU operands; cell state / LayerNorm / tanh stay f32.
    # (bf16 is beneficial on ALL generations: v5e's MXU is bf16-native and it
    #  halves the dominant xin HBM stream.)
    xin = xin.astype(mxu_dtype)
    w_ih = params["w_ih"].astype(mxu_dtype)
    w_hh = params["w_hh"].astype(mxu_dtype)
    w_head = params["w_head"].astype(mxu_dtype)

    kernel = functools.partial(_lstm_head_kernel, max_unroll=max_unroll)

    in_specs = [
        pl.BlockSpec((Bb, Tc, D), lambda bi, ti: (bi, ti, 0)),   # xin chunk
        pl.BlockSpec((Bb, H), lambda bi, ti: (bi, 0)),           # h0
        pl.BlockSpec((Bb, H), lambda bi, ti: (bi, 0)),           # c0
        pl.BlockSpec((D, 4 * H), lambda bi, ti: (0, 0)),         # w_ih
        pl.BlockSpec((H, 4 * H), lambda bi, ti: (0, 0)),         # w_hh
        pl.BlockSpec((1, 4 * H), lambda bi, ti: (0, 0)),         # bias
        pl.BlockSpec((H, obs), lambda bi, ti: (0, 0)),           # w_head
        pl.BlockSpec((1, obs), lambda bi, ti: (0, 0)),           # b_head
        pl.BlockSpec((1, obs), lambda bi, ti: (0, 0)),           # gamma
        pl.BlockSpec((1, obs), lambda bi, ti: (0, 0)),           # beta
    ]
    out_specs = (
        pl.BlockSpec((Bb, Tc, obs), lambda bi, ti: (bi, ti, 0)), # output chunk
        pl.BlockSpec((Bb, H), lambda bi, ti: (bi, 0)),           # hT (resident carry)
        pl.BlockSpec((Bb, H), lambda bi, ti: (bi, 0)),           # cT (resident carry)
    )

    out3, hT, cT = pl.pallas_call(
        kernel,
        out_shape=(
            jax.ShapeDtypeStruct((B, T, obs), jnp.float32),
            jax.ShapeDtypeStruct((B, H), jnp.float32),
            jax.ShapeDtypeStruct((B, H), jnp.float32),
        ),
        grid_spec=pltpu.PrefetchScalarGridSpec(
            num_scalar_prefetch=0,
            grid=(B // Bb, T // Tc),
            in_specs=in_specs,
            out_specs=out_specs,
            scratch_shapes=[pltpu.VMEM((Bb, Tc, 4 * H), jnp.float32),
                            pltpu.VMEM((Bb, Tc, H), jnp.float32)]),
        compiler_params=pltpu.CompilerParams(
            # batch blocks are independent ("parallel": v7x 2nd TC); the T
            # sweep carries the recurrence and must stay sequential.
            dimension_semantics=("parallel", "arbitrary"),
            vmem_limit_bytes=vmem_limit_bytes),
    )(xin, h0, c0, w_ih, w_hh, params["bias"],
      w_head, params["b_head"], params["gamma"], params["beta"])
    return out3, hT, cT


def _pick_t_chunk(T, Bb, D, H, obs, *, itemsize_in=4, budget_bytes=24 << 20):
    """Largest legal T-chunk (multiple of 8, or T itself) fitting a VMEM budget."""
    def vmem_est(tc):
        rows = Bb * tc
        return (2 * rows * D * itemsize_in       # double-buffered input chunk
                + 2 * rows * obs * 4             # double-buffered output chunk
                + rows * 4 * H * 4               # gates scratch
                + rows * H * 4                   # hidden-state scratch
                + 4 * rows * 4 * H * 4)          # live-value headroom
    cands = sorted({d for d in range(1, T + 1)
                    if T % d == 0 and (d % 8 == 0 or d == T)}, reverse=True)
    for d in cands:
        if vmem_est(d) <= budget_bytes:
            return d
    return cands[-1]


# ---------------------------------------------------------------------------
# Module wrapper (glue: flatten / concat / reshape — NO transposes)
# ---------------------------------------------------------------------------
def forward_dynamics_lstm_reduced_obs(x, acts, hs, target_shape, params, *,
                                      t_chunk=None, batch_block=None,
                                      use_bf16_mxu=False, max_unroll=32,
                                      vmem_budget_bytes=24 << 20,
                                      vmem_limit_bytes=None):
    """x: (B, T, P, 3), acts: (B, T, act_dim), hs = (h0, c0) each (1, B, H)."""
    B, T = x.shape[0], x.shape[1]
    x_flat = x.reshape(B, T, -1)                     # torch.flatten(x, 2)
    xin = jnp.concatenate([x_flat, acts], axis=2)    # (B, T, D) batch-major
    h0, c0 = hs[0][0], hs[1][0]                      # (B, H)
    H = h0.shape[-1]
    D = xin.shape[-1]
    obs = params["w_head"].shape[-1]

    Bb = B if batch_block is None else batch_block
    mxu_dtype = jnp.bfloat16 if use_bf16_mxu else jnp.float32
    if t_chunk is None:
        t_chunk = _pick_t_chunk(T, Bb, D, H, obs,
                                itemsize_in=jnp.dtype(mxu_dtype).itemsize,
                                budget_bytes=vmem_budget_bytes)

    out3, hT, cT = _run_kernel(xin, h0, c0, params, t_chunk=t_chunk,
                               batch_block=Bb, mxu_dtype=mxu_dtype,
                               max_unroll=max_unroll,
                               vmem_limit_bytes=vmem_limit_bytes)

    out = out3.reshape(target_shape)                 # same row order as torch
    return out, (hT[None, ...], cT[None, ...])


# ---------------------------------------------------------------------------
# Deterministic parameter construction (PyTorch-style uniform init)
# ---------------------------------------------------------------------------
def make_params(key, input_dim, hidden, obs_dim):
    ks = jax.random.split(key, 8)
    bound = 1.0 / jnp.sqrt(jnp.float32(hidden))
    u = lambda k, shape, b: jax.random.uniform(k, shape, jnp.float32, -b, b)

    w_ih = u(ks[0], (input_dim, 4 * hidden), bound)     # == weight_ih_l0.T
    w_hh = u(ks[1], (hidden, 4 * hidden), bound)        # == weight_hh_l0.T
    bias = u(ks[2], (1, 4 * hidden), bound) + u(ks[3], (1, 4 * hidden), bound)
    w_head = u(ks[4], (hidden, obs_dim), bound)         # == Linear.weight.T
    b_head = u(ks[5], (1, obs_dim), bound)
    gamma = jnp.ones((1, obs_dim), jnp.float32)         # LayerNorm defaults
    beta = jnp.zeros((1, obs_dim), jnp.float32)
    return dict(w_ih=w_ih, w_hh=w_hh, bias=bias,
                w_head=w_head, b_head=b_head, gamma=gamma, beta=beta)


# ---------------------------------------------------------------------------
# Pure-JAX reference (f32, highest matmul precision) for verification
# ---------------------------------------------------------------------------
def reference_forward(x, acts, hs, target_shape, params):
    hp = functools.partial(jnp.dot, precision=lax.Precision.HIGHEST)
    B, T = x.shape[0], x.shape[1]
    xin = jnp.concatenate([x.reshape(B, T, -1), acts], axis=2)
    h, c = hs[0][0], hs[1][0]
    H = h.shape[-1]
    outs = []
    for t in range(T):
        gates = hp(xin[:, t, :], params["w_ih"]) + hp(h, params["w_hh"]) + params["bias"]
        i_g = jax.nn.sigmoid(gates[:, :H])
        f_g = jax.nn.sigmoid(gates[:, H:2 * H])
        g_g = jnp.tanh(gates[:, 2 * H:3 * H])
        o_g = jax.nn.sigmoid(gates[:, 3 * H:])
        c = f_g * c + i_g * g_g
        h = o_g * jnp.tanh(c)
        y = hp(h, params["w_head"]) + params["b_head"]
        mu = jnp.mean(y, -1, keepdims=True)
        var = jnp.mean((y - mu) ** 2, -1, keepdims=True)
        y = (y - mu) * lax.rsqrt(var + 1e-5) * params["gamma"] + params["beta"]
        outs.append(jnp.tanh(y))
    out = jnp.stack(outs, axis=1).reshape(target_shape)
    return out, (h[None], c[None])


if __name__ == "__main__":
    # Small shapes consistent with the module.
    B, T = 2, 16
    num_particles = 8
    act_dim = 4
    obs_dim = 12            # 4 corners * 3 coords
    hidden = 32
    input_dim = num_particles * 3 + act_dim   # 28

    key = jax.random.PRNGKey(0)
    k_x, k_a, k_h, k_c, k_p = jax.random.split(key, 5)

    x = jax.random.normal(k_x, (B, T, num_particles, 3), jnp.float32)
    acts = jax.random.normal(k_a, (B, T, act_dim), jnp.float32)
    h0 = jax.random.normal(k_h, (1, B, hidden), jnp.float32) * 0.1
    c0 = jax.random.normal(k_c, (1, B, hidden), jnp.float32) * 0.1
    params = make_params(k_p, input_dim, hidden, obs_dim)
    target_shape = (B, T, 4, 3)

    out_r, (hT_r, cT_r) = reference_forward(x, acts, (h0, c0), target_shape, params)

    # 1) f32, T chunked (2 grid steps) -> exercises the resident hT/cT carry,
    #    fully-unrolled recurrence path.
    out, (hT, cT) = forward_dynamics_lstm_reduced_obs(
        x, acts, (h0, c0), target_shape, params, t_chunk=8)
    jax.block_until_ready((out, hT, cT))
    assert out.shape == target_shape
    assert hT.shape == (1, B, hidden) and cT.shape == (1, B, hidden)
    assert jnp.allclose(out, out_r, atol=1e-3, rtol=1e-3), "output mismatch (unrolled)"
    assert jnp.allclose(hT, hT_r, atol=1e-3, rtol=1e-3), "h_T mismatch (unrolled)"
    assert jnp.allclose(cT, cT_r, atol=1e-3, rtol=1e-3), "c_T mismatch (unrolled)"

    # 2) f32, same chunking but force the fori_loop (large-chunk) recurrence path.
    out_f, (hT_f, cT_f) = forward_dynamics_lstm_reduced_obs(
        x, acts, (h0, c0), target_shape, params, t_chunk=8, max_unroll=0)
    jax.block_until_ready((out_f, hT_f, cT_f))
    assert jnp.allclose(out_f, out_r, atol=1e-3, rtol=1e-3), "output mismatch (fori)"
    assert jnp.allclose(hT_f, hT_r, atol=1e-3, rtol=1e-3), "h_T mismatch (fori)"
    assert jnp.allclose(cT_f, cT_r, atol=1e-3, rtol=1e-3), "c_T mismatch (fori)"

    # 3) bf16 MXU operands (all generations), auto t_chunk from the VMEM budget.
    out_b, (hT_b, cT_b) = forward_dynamics_lstm_reduced_obs(
        x, acts, (h0, c0), target_shape, params, use_bf16_mxu=True)
    jax.block_until_ready((out_b, hT_b, cT_b))
    assert jnp.allclose(out_b, out_r, atol=0.25), "bf16 output mismatch"
    assert jnp.allclose(hT_b, hT_r, atol=0.25), "bf16 h_T mismatch"
    assert jnp.allclose(cT_b, cT_r, atol=0.25), "bf16 c_T mismatch"

    print("KERNEL_OK")
</pallas_src>

<mosaic_0001>
module attributes {stable_mosaic.version = 11 : i64} {
  func.func @_lstm_head_kernel(%arg0: i32, %arg1: i32, %arg2: memref<2x8x28xf32, #tpu.memory_space<vmem>>, %arg3: memref<2x32xf32, #tpu.memory_space<vmem>>, %arg4: memref<2x32xf32, #tpu.memory_space<vmem>>, %arg5: memref<28x128xf32, #tpu.memory_space<vmem>>, %arg6: memref<32x128xf32, #tpu.memory_space<vmem>>, %arg7: memref<1x128xf32, #tpu.memory_space<vmem>>, %arg8: memref<32x12xf32, #tpu.memory_space<vmem>>, %arg9: memref<1x12xf32, #tpu.memory_space<vmem>>, %arg10: memref<1x12xf32, #tpu.memory_space<vmem>>, %arg11: memref<1x12xf32, #tpu.memory_space<vmem>>, %arg12: memref<2x8x12xf32, #tpu.memory_space<vmem>>, %arg13: memref<2x32xf32, #tpu.memory_space<vmem>>, %arg14: memref<2x32xf32, #tpu.memory_space<vmem>>, %arg15: memref<2x8x128xf32, #tpu.memory_space<vmem>>, %arg16: memref<2x8x32xf32, #tpu.memory_space<vmem>>) attributes {dimension_semantics = [#tpu.dimension_semantics<parallel>, #tpu.dimension_semantics<arbitrary>], iteration_bounds = array<i64: 1, 2>, scalar_prefetch = 0 : i64, scratch_operands = 2 : i64, tpu.core_type = #tpu.core_type<tc>, window_params = [{transform_indices = @transform_0, window_bounds = array<i64: 2, 8, 28>}, {transform_indices = @transform_1, window_bounds = array<i64: 2, 32>}, {transform_indices = @transform_2, window_bounds = array<i64: 2, 32>}, {pipeline_mode = #tpu.pipeline_mode<synchronous>, transform_indices = @transform_3, window_bounds = array<i64: 28, 128>}, {pipeline_mode = #tpu.pipeline_mode<synchronous>, transform_indices = @transform_4, window_bounds = array<i64: 32, 128>}, {pipeline_mode = #tpu.pipeline_mode<synchronous>, transform_indices = @transform_5, window_bounds = array<i64: 1, 128>}, {pipeline_mode = #tpu.pipeline_mode<synchronous>, transform_indices = @transform_6, window_bounds = array<i64: 32, 12>}, {pipeline_mode = #tpu.pipeline_mode<synchronous>, transform_indices = @transform_7, window_bounds = array<i64: 1, 12>}, {pipeline_mode = #tpu.pipeline_mode<synchronous>, transform_indices = @transform_8, window_bounds = array<i64: 1, 12>}, {pipeline_mode = #tpu.pipeline_mode<synchronous>, transform_indices = @transform_9, window_bounds = array<i64: 1, 12>}, {transform_indices = @transform_10, window_bounds = array<i64: 2, 8, 12>}, {transform_indices = @transform_11, window_bounds = array<i64: 2, 32>}, {transform_indices = @transform_12, window_bounds = array<i64: 2, 32>}]} {
    %c0_i32 = arith.constant 0 : i32
    %0 = arith.cmpi eq, %arg1, %c0_i32 : i32
    %1 = arith.extui %0 : i1 to i32
    %c0_i32_0 = arith.constant 0 : i32
    %2 = arith.cmpi ne, %1, %c0_i32_0 : i32
    scf.if %2 {
      %c0_70 = arith.constant 0 : index
      %c0_71 = arith.constant 0 : index
      %213 = vector.load %arg3[%c0_70, %c0_71] : memref<2x32xf32, #tpu.memory_space<vmem>>, vector<2x32xf32>
      %c0_72 = arith.constant 0 : index
      %c0_73 = arith.constant 0 : index
      %214 = vector.load %arg13[%c0_72, %c0_73] : memref<2x32xf32, #tpu.memory_space<vmem>>, vector<2x32xf32>
      tpu.vector_store %arg13[%c0_72, %c0_73], %213 {strides = array<i32>} : memref<2x32xf32, #tpu.memory_space<vmem>>, vector<2x32xf32>,
      %c0_74 = arith.constant 0 : index
      %c0_75 = arith.constant 0 : index
      %215 = vector.load %arg4[%c0_74, %c0_75] : memref<2x32xf32, #tpu.memory_space<vmem>>, vector<2x32xf32>
      %c0_76 = arith.constant 0 : index
      %c0_77 = arith.constant 0 : index
      %216 = vector.load %arg14[%c0_76, %c0_77] : memref<2x32xf32, #tpu.memory_space<vmem>>, vector<2x32xf32>
      tpu.vector_store %arg14[%c0_76, %c0_77], %215 {strides = array<i32>} : memref<2x32xf32, #tpu.memory_space<vmem>>, vector<2x32xf32>,
    } else {
    }
    %c0 = arith.constant 0 : index
    %c0_1 = arith.constant 0 : index
    %3 = vector.load %arg6[%c0, %c0_1] : memref<32x128xf32, #tpu.memory_space<vmem>>, vector<32x128xf32>
    %c0_2 = arith.constant 0 : index
    %c0_3 = arith.constant 0 : index
    %c0_4 = arith.constant 0 : index
    %4 = vector.load %arg2[%c0_2, %c0_3, %c0_4] : memref<2x8x28xf32, #tpu.memory_space<vmem>>, vector<2x8x28xf32>
    %5 = vector.shape_cast %4 : vector<2x8x28xf32> to vector<16x28xf32>
    %c0_5 = arith.constant 0 : index
    %c0_6 = arith.constant 0 : index
    %6 = vector.load %arg5[%c0_5, %c0_6] : memref<28x128xf32, #tpu.memory_space<vmem>>, vector<28x128xf32>
    %cst = arith.constant dense<0.000000e+00> : vector<16x128xf32>
    %7 = tpu.matmul %5, %6, %cst {dimension_numbers = #tpu.dot_dimension_numbers<[1], [0], [0], [1], [0, 0, 1, 1], [], []>} : vector<16x28xf32>, vector<28x128xf32>, vector<16x128xf32> -> vector<16x128xf32>
    %c0_7 = arith.constant 0 : index
    %c0_8 = arith.constant 0 : index
    %8 = vector.load %arg7[%c0_7, %c0_8] : memref<1x128xf32, #tpu.memory_space<vmem>>, vector<1x128xf32>
    %9 = vector.broadcast %8 : vector<1x128xf32> to vector<16x128xf32>
    %10 = arith.addf %7, %9 : vector<16x128xf32>
    %11 = vector.shape_cast %10 : vector<16x128xf32> to vector<2x8x128xf32>
    %c0_9 = arith.constant 0 : index
    %c0_10 = arith.constant 0 : index
    %c0_11 = arith.constant 0 : index
    %12 = vector.load %arg15[%c0_9, %c0_10, %c0_11] : memref<2x8x128xf32, #tpu.memory_space<vmem>>, vector<2x8x128xf32>
    tpu.vector_store %arg15[%c0_9, %c0_10, %c0_11], %11 {strides = array<i32>} : memref<2x8x128xf32, #tpu.memory_space<vmem>>, vector<2x8x128xf32>,
    %c0_12 = arith.constant 0 : index
    %c0_13 = arith.constant 0 : index
    %13 = vector.load %arg13[%c0_12, %c0_13] : memref<2x32xf32, #tpu.memory_space<vmem>>, vector<2x32xf32>
    %c0_14 = arith.constant 0 : index
    %c0_15 = arith.constant 0 : index
    %14 = vector.load %arg14[%c0_14, %c0_15] : memref<2x32xf32, #tpu.memory_space<vmem>>, vector<2x32xf32>
    %c0_16 = arith.constant 0 : index
    %c0_17 = arith.constant 0 : index
    %c0_18 = arith.constant 0 : index
    %15 = vector.load %arg15[%c0_16, %c0_17, %c0_18] : memref<2x8x128xf32, #tpu.memory_space<vmem>>, vector<2x1x128xf32>
    %16 = vector.shape_cast %15 : vector<2x1x128xf32> to vector<2x128xf32>
    %cst_19 = arith.constant dense<0.000000e+00> : vector<2x128xf32>
    %17 = tpu.matmul %13, %3, %cst_19 {dimension_numbers = #tpu.dot_dimension_numbers<[1], [0], [0], [1], [0, 0, 1, 1], [], []>} : vector<2x32xf32>, vector<32x128xf32>, vector<2x128xf32> -> vector<2x128xf32>
    %18 = arith.addf %16, %17 : vector<2x128xf32>
    %19 = arith.negf %18 : vector<2x128xf32>
    %20 = math.exp %19 : vector<2x128xf32>
    %cst_20 = arith.constant 1.000000e+00 : f32
    %21 = vector.broadcast %cst_20 : f32 to vector<2x128xf32>
    %22 = arith.addf %21, %20 : vector<2x128xf32>
    %23 = arith.divf %21, %22 : vector<2x128xf32>
    %24 = math.tanh %18 : vector<2x128xf32>
    %25 = vector.extract_strided_slice %23 {offsets = [0, 0], sizes = [2, 32], strides = [1, 1]} : vector<2x128xf32> to vector<2x32xf32>
    %26 = vector.extract_strided_slice %23 {offsets = [0, 32], sizes = [2, 32], strides = [1, 1]} : vector<2x128xf32> to vector<2x32xf32>
    %27 = vector.extract_strided_slice %24 {offsets = [0, 64], sizes = [2, 32], strides = [1, 1]} : vector<2x128xf32> to vector<2x32xf32>
    %28 = vector.extract_strided_slice %23 {offsets = [0, 96], sizes = [2, 32], strides = [1, 1]} : vector<2x128xf32> to vector<2x32xf32>
    %29 = arith.mulf %26, %14 : vector<2x32xf32>
    %30 = arith.mulf %25, %27 : vector<2x32xf32>
    %31 = arith.addf %29, %30 : vector<2x32xf32>
    %32 = math.tanh %31 : vector<2x32xf32>
    %33 = arith.mulf %28, %32 : vector<2x32xf32>
    %c0_21 = arith.constant 0 : index
    %c1 = arith.constant 1 : index
    %c0_22 = arith.constant 0 : index
    %34 = vector.load %arg15[%c0_21, %c1, %c0_22] : memref<2x8x128xf32, #tpu.memory_space<vmem>>, vector<2x1x128xf32>
    %35 = vector.shape_cast %34 : vector<2x1x128xf32> to vector<2x128xf32>
    %cst_23 = arith.constant dense<0.000000e+00> : vector<2x128xf32>
    %36 = tpu.matmul %33, %3, %cst_23 {dimension_numbers = #tpu.dot_dimension_numbers<[1], [0], [0], [1], [0, 0, 1, 1], [], []>} : vector<2x32xf32>, vector<32x128xf32>, vector<2x128xf32> -> vector<2x128xf32>
    %37 = arith.addf %35, %36 : vector<2x128xf32>
    %38 = arith.negf %37 : vector<2x128xf32>
    %39 = math.exp %38 : vector<2x128xf32>
    %cst_24 = arith.constant 1.000000e+00 : f32
    %40 = vector.broadcast %cst_24 : f32 to vector<2x128xf32>
    %41 = arith.addf %40, %39 : vector<2x128xf32>
    %42 = arith.divf %40, %41 : vector<2x128xf32>
    %43 = math.tanh %37 : vector<2x128xf32>
    %44 = vector.extract_strided_slice %42 {offsets = [0, 0], sizes = [2, 32], strides = [1, 1]} : vector<2x128xf32> to vector<2x32xf32>
    %45 = vector.extract_strided_slice %42 {offsets = [0, 32], sizes = [2, 32], strides = [1, 1]} : vector<2x128xf32> to vector<2x32xf32>
    %46 = vector.extract_strided_slice %43 {offsets = [0, 64], sizes = [2, 32], strides = [1, 1]} : vector<2x128xf32> to vector<2x32xf32>
    %47 = vector.extract_strided_slice %42 {offsets = [0, 96], sizes = [2, 32], strides = [1, 1]} : vector<2x128xf32> to vector<2x32xf32>
    %48 = arith.mulf %45, %31 : vector<2x32xf32>
    %49 = arith.mulf %44, %46 : vector<2x32xf32>
    %50 = arith.addf %48, %49 : vector<2x32xf32>
    %51 = math.tanh %50 : vector<2x32xf32>
    %52 = arith.mulf %47, %51 : vector<2x32xf32>
    %c0_25 = arith.constant 0 : index
    %c2 = arith.constant 2 : index
    %c0_26 = arith.constant 0 : index
    %53 = vector.load %arg15[%c0_25, %c2, %c0_26] : memref<2x8x128xf32, #tpu.memory_space<vmem>>, vector<2x1x128xf32>
    %54 = vector.shape_cast %53 : vector<2x1x128xf32> to vector<2x128xf32>
    %cst_27 = arith.constant dense<0.000000e+00> : vector<2x128xf32>
    %55 = tpu.matmul %52, %3, %cst_27 {dimension_numbers = #tpu.dot_dimension_numbers<[1], [0], [0], [1], [0, 0, 1, 1], [], []>} : vector<2x32xf32>, vector<32x128xf32>, vector<2x128xf32> -> vector<2x128xf32>
    %56 = arith.addf %54, %55 : vector<2x128xf32>
    %57 = arith.negf %56 : vector<2x128xf32>
    %58 = math.exp %57 : vector<2x128xf32>
    %cst_28 = arith.constant 1.000000e+00 : f32
    %59 = vector.broadcast %cst_28 : f32 to vector<2x128xf32>
    %60 = arith.addf %59, %58 : vector<2x128xf32>
    %61 = arith.divf %59, %60 : vector<2x128xf32>
    %62 = math.tanh %56 : vector<2x128xf32>
    %63 = vector.extract_strided_slice %61 {offsets = [0, 0], sizes = [2, 32], strides = [1, 1]} : vector<2x128xf32> to vector<2x32xf32>
    %64 = vector.extract_strided_slice %61 {offsets = [0, 32], sizes = [2, 32], strides = [1, 1]} : vector<2x128xf32> to vector<2x32xf32>
    %65 = vector.extract_strided_slice %62 {offsets = [0, 64], sizes = [2, 32], strides = [1, 1]} : vector<2x128xf32> to vector<2x32xf32>
    %66 = vector.extract_strided_slice %61 {offsets = [0, 96], sizes = [2, 32], strides = [1, 1]} : vector<2x128xf32> to vector<2x32xf32>
    %67 = arith.mulf %64, %50 : vector<2x32xf32>
    %68 = arith.mulf %63, %65 : vector<2x32xf32>
    %69 = arith.addf %67, %68 : vector<2x32xf32>
    %70 = math.tanh %69 : vector<2x32xf32>
    %71 = arith.mulf %66, %70 : vector<2x32xf32>
    %c0_29 = arith.constant 0 : index
    %c3 = arith.constant 3 : index
    %c0_30 = arith.constant 0 : index
    %72 = vector.load %arg15[%c0_29, %c3, %c0_30] : memref<2x8x128xf32, #tpu.memory_space<vmem>>, vector<2x1x128xf32>
    %73 = vector.shape_cast %72 : vector<2x1x128xf32> to vector<2x128xf32>
    %cst_31 = arith.constant dense<0.000000e+00> : vector<2x128xf32>
    %74 = tpu.matmul %71, %3, %cst_31 {dimension_numbers = #tpu.dot_dimension_numbers<[1], [0], [0], [1], [0, 0, 1, 1], [], []>} : vector<2x32xf32>, vector<32x128xf32>, vector<2x128xf32> -> vector<2x128xf32>
    %75 = arith.addf %73, %74 : vector<2x128xf32>
    %76 = arith.negf %75 : vector<2x128xf32>
    %77 = math.exp %76 : vector<2x128xf32>
    %cst_32 = arith.constant 1.000000e+00 : f32
    %78 = vector.broadcast %cst_32 : f32 to vector<2x128xf32>
    %79 = arith.addf %78, %77 : vector<2x128xf32>
    %80 = arith.divf %78, %79 : vector<2x128xf32>
    %81 = math.tanh %75 : vector<2x128xf32>
    %82 = vector.extract_strided_slice %80 {offsets = [0, 0], sizes = [2, 32], strides = [1, 1]} : vector<2x128xf32> to vector<2x32xf32>
    %83 = vector.extract_strided_slice %80 {offsets = [0, 32], sizes = [2, 32], strides = [1, 1]} : vector<2x128xf32> to vector<2x32xf32>
    %84 = vector.extract_strided_slice %81 {offsets = [0, 64], sizes = [2, 32], strides = [1, 1]} : vector<2x128xf32> to vector<2x32xf32>
    %85 = vector.extract_strided_slice %80 {offsets = [0, 96], sizes = [2, 32], strides = [1, 1]} : vector<2x128xf32> to vector<2x32xf32>
    %86 = arith.mulf %83, %69 : vector<2x32xf32>
    %87 = arith.mulf %82, %84 : vector<2x32xf32>
    %88 = arith.addf %86, %87 : vector<2x32xf32>
    %89 = math.tanh %88 : vector<2x32xf32>
    %90 = arith.mulf %85, %89 : vector<2x32xf32>
    %c0_33 = arith.constant 0 : index
    %c4 = arith.constant 4 : index
    %c0_34 = arith.constant 0 : index
    %91 = vector.load %arg15[%c0_33, %c4, %c0_34] : memref<2x8x128xf32, #tpu.memory_space<vmem>>, vector<2x1x128xf32>
    %92 = vector.shape_cast %91 : vector<2x1x128xf32> to vector<2x128xf32>
    %cst_35 = arith.constant dense<0.000000e+00> : vector<2x128xf32>
    %93 = tpu.matmul %90, %3, %cst_35 {dimension_numbers = #tpu.dot_dimension_numbers<[1], [0], [0], [1], [0, 0, 1, 1], [], []>} : vector<2x32xf32>, vector<32x128xf32>, vector<2x128xf32> -> vector<2x128xf32>
    %94 = arith.addf %92, %93 : vector<2x128xf32>
    %95 = arith.negf %94 : vector<2x128xf32>
    %96 = math.exp %95 : vector<2x128xf32>
    %cst_36 = arith.constant 1.000000e+00 : f32
    %97 = vector.broadcast %cst_36 : f32 to vector<2x128xf32>
    %98 = arith.addf %97, %96 : vector<2x128xf32>
    %99 = arith.divf %97, %98 : vector<2x128xf32>
    %100 = math.tanh %94 : vector<2x128xf32>
    %101 = vector.extract_strided_slice %99 {offsets = [0, 0], sizes = [2, 32], strides = [1, 1]} : vector<2x128xf32> to vector<2x32xf32>
    %102 = vector.extract_strided_slice %99 {offsets = [0, 32], sizes = [2, 32], strides = [1, 1]} : vector<2x128xf32> to vector<2x32xf32>
    %103 = vector.extract_strided_slice %100 {offsets = [0, 64], sizes = [2, 32], strides = [1, 1]} : vector<2x128xf32> to vector<2x32xf32>
    %104 = vector.extract_strided_slice %99 {offsets = [0, 96], sizes = [2, 32], strides = [1, 1]} : vector<2x128xf32> to vector<2x32xf32>
    %105 = arith.mulf %102, %88 : vector<2x32xf32>
    %106 = arith.mulf %101, %103 : vector<2x32xf32>
    %107 = arith.addf %105, %106 : vector<2x32xf32>
    %108 = math.tanh %107 : vector<2x32xf32>
    %109 = arith.mulf %104, %108 : vector<2x32xf32>
    %c0_37 = arith.constant 0 : index
    %c5 = arith.constant 5 : index
    %c0_38 = arith.constant 0 : index
    %110 = vector.load %arg15[%c0_37, %c5, %c0_38] : memref<2x8x128xf32, #tpu.memory_space<vmem>>, vector<2x1x128xf32>
    %111 = vector.shape_cast %110 : vector<2x1x128xf32> to vector<2x128xf32>
    %cst_39 = arith.constant dense<0.000000e+00> : vector<2x128xf32>
    %112 = tpu.matmul %109, %3, %cst_39 {dimension_numbers = #tpu.dot_dimension_numbers<[1], [0], [0], [1], [0, 0, 1, 1], [], []>} : vector<2x32xf32>, vector<32x128xf32>, vector<2x128xf32> -> vector<2x128xf32>
    %113 = arith.addf %111, %112 : vector<2x128xf32>
    %114 = arith.negf %113 : vector<2x128xf32>
    %115 = math.exp %114 : vector<2x128xf32>
    %cst_40 = arith.constant 1.000000e+00 : f32
    %116 = vector.broadcast %cst_40 : f32 to vector<2x128xf32>
    %117 = arith.addf %116, %115 : vector<2x128xf32>
    %118 = arith.divf %116, %117 : vector<2x128xf32>
    %119 = math.tanh %113 : vector<2x128xf32>
    %120 = vector.extract_strided_slice %118 {offsets = [0, 0], sizes = [2, 32], strides = [1, 1]} : vector<2x128xf32> to vector<2x32xf32>
    %121 = vector.extract_strided_slice %118 {offsets = [0, 32], sizes = [2, 32], strides = [1, 1]} : vector<2x128xf32> to vector<2x32xf32>
    %122 = vector.extract_strided_slice %119 {offsets = [0, 64], sizes = [2, 32], strides = [1, 1]} : vector<2x128xf32> to vector<2x32xf32>
    %123 = vector.extract_strided_slice %118 {offsets = [0, 96], sizes = [2, 32], strides = [1, 1]} : vector<2x128xf32> to vector<2x32xf32>
    %124 = arith.mulf %121, %107 : vector<2x32xf32>
    %125 = arith.mulf %120, %122 : vector<2x32xf32>
    %126 = arith.addf %124, %125 : vector<2x32xf32>
    %127 = math.tanh %126 : vector<2x32xf32>
    %128 = arith.mulf %123, %127 : vector<2x32xf32>
    %c0_41 = arith.constant 0 : index
    %c6 = arith.constant 6 : index
    %c0_42 = arith.constant 0 : index
    %129 = vector.load %arg15[%c0_41, %c6, %c0_42] : memref<2x8x128xf32, #tpu.memory_space<vmem>>, vector<2x1x128xf32>
    %130 = vector.shape_cast %129 : vector<2x1x128xf32> to vector<2x128xf32>
    %cst_43 = arith.constant dense<0.000000e+00> : vector<2x128xf32>
    %131 = tpu.matmul %128, %3, %cst_43 {dimension_numbers = #tpu.dot_dimension_numbers<[1], [0], [0], [1], [0, 0, 1, 1], [], []>} : vector<2x32xf32>, vector<32x128xf32>, vector<2x128xf32> -> vector<2x128xf32>
    %132 = arith.addf %130, %131 : vector<2x128xf32>
    %133 = arith.negf %132 : vector<2x128xf32>
    %134 = math.exp %133 : vector<2x128xf32>
    %cst_44 = arith.constant 1.000000e+00 : f32
    %135 = vector.broadcast %cst_44 : f32 to vector<2x128xf32>
    %136 = arith.addf %135, %134 : vector<2x128xf32>
    %137 = arith.divf %135, %136 : vector<2x128xf32>
    %138 = math.tanh %132 : vector<2x128xf32>
    %139 = vector.extract_strided_slice %137 {offsets = [0, 0], sizes = [2, 32], strides = [1, 1]} : vector<2x128xf32> to vector<2x32xf32>
    %140 = vector.extract_strided_slice %137 {offsets = [0, 32], sizes = [2, 32], strides = [1, 1]} : vector<2x128xf32> to vector<2x32xf32>
    %141 = vector.extract_strided_slice %138 {offsets = [0, 64], sizes = [2, 32], strides = [1, 1]} : vector<2x128xf32> to vector<2x32xf32>
    %142 = vector.extract_strided_slice %137 {offsets = [0, 96], sizes = [2, 32], strides = [1, 1]} : vector<2x128xf32> to vector<2x32xf32>
    %143 = arith.mulf %140, %126 : vector<2x32xf32>
    %144 = arith.mulf %139, %141 : vector<2x32xf32>
    %145 = arith.addf %143, %144 : vector<2x32xf32>
    %146 = math.tanh %145 : vector<2x32xf32>
    %147 = arith.mulf %142, %146 : vector<2x32xf32>
    %c0_45 = arith.constant 0 : index
    %c7 = arith.constant 7 : index
    %c0_46 = arith.constant 0 : index
    %148 = vector.load %arg15[%c0_45, %c7, %c0_46] : memref<2x8x128xf32, #tpu.memory_space<vmem>>, vector<2x1x128xf32>
    %149 = vector.shape_cast %148 : vector<2x1x128xf32> to vector<2x128xf32>
    %cst_47 = arith.constant dense<0.000000e+00> : vector<2x128xf32>
    %150 = tpu.matmul %147, %3, %cst_47 {dimension_numbers = #tpu.dot_dimension_numbers<[1], [0], [0], [1], [0, 0, 1, 1], [], []>} : vector<2x32xf32>, vector<32x128xf32>, vector<2x128xf32> -> vector<2x128xf32>
    %151 = arith.addf %149, %150 : vector<2x128xf32>
    %152 = arith.negf %151 : vector<2x128xf32>
    %153 = math.exp %152 : vector<2x128xf32>
    %cst_48 = arith.constant 1.000000e+00 : f32
    %154 = vector.broadcast %cst_48 : f32 to vector<2x128xf32>
    %155 = arith.addf %154, %153 : vector<2x128xf32>
    %156 = arith.divf %154, %155 : vector<2x128xf32>
    %157 = math.tanh %151 : vector<2x128xf32>
    %158 = vector.extract_strided_slice %156 {offsets = [0, 0], sizes = [2, 32], strides = [1, 1]} : vector<2x128xf32> to vector<2x32xf32>
    %159 = vector.extract_strided_slice %156 {offsets = [0, 32], sizes = [2, 32], strides = [1, 1]} : vector<2x128xf32> to vector<2x32xf32>
    %160 = vector.extract_strided_slice %157 {offsets = [0, 64], sizes = [2, 32], strides = [1, 1]} : vector<2x128xf32> to vector<2x32xf32>
    %161 = vector.extract_strided_slice %156 {offsets = [0, 96], sizes = [2, 32], strides = [1, 1]} : vector<2x128xf32> to vector<2x32xf32>
    %162 = arith.mulf %159, %145 : vector<2x32xf32>
    %163 = arith.mulf %158, %160 : vector<2x32xf32>
    %164 = arith.addf %162, %163 : vector<2x32xf32>
    %165 = math.tanh %164 : vector<2x32xf32>
    %166 = arith.mulf %161, %165 : vector<2x32xf32>
    %167 = vector.shape_cast %33 : vector<2x32xf32> to vector<2x1x32xf32>
    %168 = vector.shape_cast %52 : vector<2x32xf32> to vector<2x1x32xf32>
    %169 = vector.shape_cast %71 : vector<2x32xf32> to vector<2x1x32xf32>
    %170 = vector.shape_cast %90 : vector<2x32xf32> to vector<2x1x32xf32>
    %171 = vector.shape_cast %109 : vector<2x32xf32> to vector<2x1x32xf32>
    %172 = vector.shape_cast %128 : vector<2x32xf32> to vector<2x1x32xf32>
    %173 = vector.shape_cast %147 : vector<2x32xf32> to vector<2x1x32xf32>
    %174 = vector.shape_cast %166 : vector<2x32xf32> to vector<2x1x32xf32>
    %175 = tpu.concatenate %167, %168, %169, %170, %171, %172, %173, %174 in 1 : vector<2x1x32xf32>, vector<2x1x32xf32>, vector<2x1x32xf32>, vector<2x1x32xf32>, vector<2x1x32xf32>, vector<2x1x32xf32>, vector<2x1x32xf32>, vector<2x1x32xf32> -> vector<2x8x32xf32>
    %c0_49 = arith.constant 0 : index
    %c0_50 = arith.constant 0 : index
    %176 = vector.load %arg13[%c0_49, %c0_50] : memref<2x32xf32, #tpu.memory_space<vmem>>, vector<2x32xf32>
    tpu.vector_store %arg13[%c0_49, %c0_50], %166 {strides = array<i32>} : memref<2x32xf32, #tpu.memory_space<vmem>>, vector<2x32xf32>,
    %c0_51 = arith.constant 0 : index
    %c0_52 = arith.constant 0 : index
    %177 = vector.load %arg14[%c0_51, %c0_52] : memref<2x32xf32, #tpu.memory_space<vmem>>, vector<2x32xf32>
    tpu.vector_store %arg14[%c0_51, %c0_52], %164 {strides = array<i32>} : memref<2x32xf32, #tpu.memory_space<vmem>>, vector<2x32xf32>,
    %178 = vector.shape_cast %175 : vector<2x8x32xf32> to vector<16x32xf32>
    %c0_53 = arith.constant 0 : index
    %c0_54 = arith.constant 0 : index
    %179 = vector.load %arg8[%c0_53, %c0_54] : memref<32x12xf32, #tpu.memory_space<vmem>>, vector<32x12xf32>
    %cst_55 = arith.constant dense<0.000000e+00> : vector<16x12xf32>
    %180 = tpu.matmul %178, %179, %cst_55 {dimension_numbers = #tpu.dot_dimension_numbers<[1], [0], [0], [1], [0, 0, 1, 1], [], []>} : vector<16x32xf32>, vector<32x12xf32>, vector<16x12xf32> -> vector<16x12xf32>
    %c0_56 = arith.constant 0 : index
    %c0_57 = arith.constant 0 : index
    %181 = vector.load %arg9[%c0_56, %c0_57] : memref<1x12xf32, #tpu.memory_space<vmem>>, vector<1x12xf32>
    %182 = vector.broadcast %181 : vector<1x12xf32> to vector<16x12xf32>
    %183 = arith.addf %180, %182 : vector<16x12xf32>
    %cst_58 = arith.constant dense<0.000000e+00> : vector<16xf32>
    %184 = vector.multi_reduction <add>, %183, %cst_58 [1] : vector<16x12xf32> to vector<16xf32>
    %185 = vector.shape_cast %184 : vector<16xf32> to vector<16x1xf32>
    %cst_59 = arith.constant 1.200000e+01 : f32
    %186 = vector.broadcast %cst_59 : f32 to vector<16x1xf32>
    %187 = arith.divf %185, %186 : vector<16x1xf32>
    %188 = vector.broadcast %187 : vector<16x1xf32> to vector<16x12xf32>
    %189 = arith.subf %183, %188 : vector<16x12xf32>
    %190 = vector.broadcast %187 : vector<16x1xf32> to vector<16x12xf32>
    %191 = arith.subf %183, %190 : vector<16x12xf32>
    %192 = arith.mulf %189, %191 : vector<16x12xf32>
    %cst_60 = arith.constant dense<0.000000e+00> : vector<16xf32>
    %193 = vector.multi_reduction <add>, %192, %cst_60 [1] : vector<16x12xf32> to vector<16xf32>
    %194 = vector.shape_cast %193 : vector<16xf32> to vector<16x1xf32>
    %cst_61 = arith.constant 1.200000e+01 : f32
    %195 = vector.broadcast %cst_61 : f32 to vector<16x1xf32>
    %196 = arith.divf %194, %195 : vector<16x1xf32>
    %197 = vector.broadcast %187 : vector<16x1xf32> to vector<16x12xf32>
    %198 = arith.subf %183, %197 : vector<16x12xf32>
    %cst_62 = arith.constant 9.99999974E-6 : f32
    %199 = vector.broadcast %cst_62 : f32 to vector<16x1xf32>
    %200 = arith.addf %196, %199 : vector<16x1xf32>
    %201 = math.rsqrt %200 : vector<16x1xf32>
    %202 = vector.broadcast %201 : vector<16x1xf32> to vector<16x12xf32>
    %203 = arith.mulf %198, %202 : vector<16x12xf32>
    %c0_63 = arith.constant 0 : index
    %c0_64 = arith.constant 0 : index
    %204 = vector.load %arg10[%c0_63, %c0_64] : memref<1x12xf32, #tpu.memory_space<vmem>>, vector<1x12xf32>
    %205 = vector.broadcast %204 : vector<1x12xf32> to vector<16x12xf32>
    %206 = arith.mulf %203, %205 : vector<16x12xf32>
    %c0_65 = arith.constant 0 : index
    %c0_66 = arith.constant 0 : index
    %207 = vector.load %arg11[%c0_65, %c0_66] : memref<1x12xf32, #tpu.memory_space<vmem>>, vector<1x12xf32>
    %208 = vector.broadcast %207 : vector<1x12xf32> to vector<16x12xf32>
    %209 = arith.addf %206, %208 : vector<16x12xf32>
    %210 = math.tanh %209 : vector<16x12xf32>
    %211 = vector.shape_cast %210 : vector<16x12xf32> to vector<2x8x12xf32>
    %c0_67 = arith.constant 0 : index
    %c0_68 = arith.constant 0 : index
    %c0_69 = arith.constant 0 : index
    %212 = vector.load %arg12[%c0_67, %c0_68, %c0_69] : memref<2x8x12xf32, #tpu.memory_space<vmem>>, vector<2x8x12xf32>
    tpu.vector_store %arg12[%c0_67, %c0_68, %c0_69], %211 {strides = array<i32>} : memref<2x8x12xf32, #tpu.memory_space<vmem>>, vector<2x8x12xf32>,
    return
  }
  func.func @transform_0(%arg0: i32, %arg1: i32) -> (i32, i32, i32) {
    %c0_i32 = arith.constant 0 : i32
    %c0_i32_0 = arith.constant 0 : i32
    return %arg0, %arg1, %c0_i32 : i32, i32, i32
  }
  func.func @transform_1(%arg0: i32, %arg1: i32) -> (i32, i32) {
    %c0_i32 = arith.constant 0 : i32
    %c0_i32_0 = arith.constant 0 : i32
    return %arg0, %c0_i32 : i32, i32
  }
  func.func @transform_2(%arg0: i32, %arg1: i32) -> (i32, i32) {
    %c0_i32 = arith.constant 0 : i32
    %c0_i32_0 = arith.constant 0 : i32
    return %arg0, %c0_i32 : i32, i32
  }
  func.func @transform_3(%arg0: i32, %arg1: i32) -> (i32, i32) {
    %c0_i32 = arith.constant 0 : i32
    %c0_i32_0 = arith.constant 0 : i32
    %c0_i32_1 = arith.constant 0 : i32
    return %c0_i32, %c0_i32_0 : i32, i32
  }
  func.func @transform_4(%arg0: i32, %arg1: i32) -> (i32, i32) {
    %c0_i32 = arith.constant 0 : i32
    %c0_i32_0 = arith.constant 0 : i32
    %c0_i32_1 = arith.constant 0 : i32
    return %c0_i32, %c0_i32_0 : i32, i32
  }
  func.func @transform_5(%arg0: i32, %arg1: i32) -> (i32, i32) {
    %c0_i32 = arith.constant 0 : i32
    %c0_i32_0 = arith.constant 0 : i32
    %c0_i32_1 = arith.constant 0 : i32
    return %c0_i32, %c0_i32_0 : i32, i32
  }
  func.func @transform_6(%arg0: i32, %arg1: i32) -> (i32, i32) {
    %c0_i32 = arith.constant 0 : i32
    %c0_i32_0 = arith.constant 0 : i32
    %c0_i32_1 = arith.constant 0 : i32
    return %c0_i32, %c0_i32_0 : i32, i32
  }
  func.func @transform_7(%arg0: i32, %arg1: i32) -> (i32, i32) {
    %c0_i32 = arith.constant 0 : i32
    %c0_i32_0 = arith.constant 0 : i32
    %c0_i32_1 = arith.constant 0 : i32
    return %c0_i32, %c0_i32_0 : i32, i32
  }
  func.func @transform_8(%arg0: i32, %arg1: i32) -> (i32, i32) {
    %c0_i32 = arith.constant 0 : i32
    %c0_i32_0 = arith.constant 0 : i32
    %c0_i32_1 = arith.constant 0 : i32
    return %c0_i32, %c0_i32_0 : i32, i32
  }
  func.func @transform_9(%arg0: i32, %arg1: i32) -> (i32, i32) {
    %c0_i32 = arith.constant 0 : i32
    %c0_i32_0 = arith.constant 0 : i32
    %c0_i32_1 = arith.constant 0 : i32
    return %c0_i32, %c0_i32_0 : i32, i32
  }
  func.func @transform_10(%arg0: i32, %arg1: i32) -> (i32, i32, i32) {
    %c0_i32 = arith.constant 0 : i32
    %c0_i32_0 = arith.constant 0 : i32
    return %arg0, %arg1, %c0_i32 : i32, i32, i32
  }
  func.func @transform_11(%arg0: i32, %arg1: i32) -> (i32, i32) {
    %c0_i32 = arith.constant 0 : i32
    %c0_i32_0 = arith.constant 0 : i32
    return %arg0, %c0_i32 : i32, i32
  }
  func.func @transform_12(%arg0: i32, %arg1: i32) -> (i32, i32) {
    %c0_i32 = arith.constant 0 : i32
    %c0_i32_0 = arith.constant 0 : i32
    return %arg0, %c0_i32 : i32, i32
  }
}

</mosaic_0001>

<bundles_post_ra>
// kernel: tpu_custom_call.1
= control target key start
LH: loop header
LB: loop body
LE: loop exit
PB: predicated region body
PF: predicated region fallthrough
CT: control target
= control target key end

     0   :  { %s3268_s0 = inlined_call_operand.vmem [shape: f32[2,16,28], index: 0, kind: input, shape index: {}]   ;;  %s3269_s1 = inlined_call_operand.vmem [shape: f32[2,32], index: 1, kind: input, shape index: {}]   ;;  %s3270_s2 = inlined_call_operand.vmem [shape: f32[2,32], index: 2, kind: input, shape index: {}]   ;;  %s3271_s3 = inlined_call_operand.hbm [shape: f32[28,128], index: 3, kind: input, shape index: {}]   ;;  %s3272_s4 = inlined_call_operand.hbm [shape: f32[32,128], index: 4, kind: input, shape index: {}]   ;;  %s3273_s5 = inlined_call_operand.vmem [shape: f32[1,128], index: 5, kind: input, shape index: {}]   ;;  %s3274_s6 = inlined_call_operand.vmem [shape: f32[32,12], index: 6, kind: input, shape index: {}]   ;;  %s3275_s7 = inlined_call_operand.vmem [shape: f32[1,12], index: 7, kind: input, shape index: {}]   ;;  %s3276_s8 = inlined_call_operand.vmem [shape: f32[1,12], index: 8, kind: input, shape index: {}]   ;;  %s3277_s9 = inlined_call_operand.vmem [shape: f32[1,12], index: 9, kind: input, shape index: {}]   ;;  %s3278_s10 = inlined_call_operand.vmem [shape: f32[2,16,12], index: 10, kind: output, shape index: {0}]   ;;  %s3279_s11 = inlined_call_operand.hbm [shape: f32[2,32], index: 11, kind: output, shape index: {1}]   ;;  %s3280_s12 = inlined_call_operand.hbm [shape: f32[2,32], index: 12, kind: output, shape index: {2}]  }
   0x1   :  { %3288 = sst [smem:[#allocation21_spill]] %s3271_s3 }
   0x2   :  { %3289 = sst [smem:[#allocation22_spill]] %s3279_s11 }
   0x3   :  { %3290 = sst [smem:[#allocation23_spill]] %s3280_s12 }
   0x4   :  { %18 = vsyncpa [#allocation6], 0 }
   0x5   :  { %19 = vsyncpa [#allocation9], 0 }
   0x6   :  { %20 = vsyncpa [#allocation7], 0 }
   0x7   :  { %21 = vsyncpa [#allocation13], 0  ;;  %s2835_s21 = smov 0   ;;  %s2837_s22 = smov 0  }
   0x8   :  { %s2839_s23 = smov 0   ;;  %s2841_s24 = smov 0  }
   0x9   :  { %s2843_s25 = smov 0  }
   0xa LB: > { %s2166_s26 = sadd.s32 4294967295, %s2757_s25   ;;  %s36_s27 = sadd.s32 1, %s2753_s24  ;;  %s2757_s25 = sphi %s2843_s25, %s27_s25   ;;  %s2753_s24 = sphi %s2841_s24, %s3312_s24   ;;  %s2749_s23 = sphi %s2839_s23, %s3311_s23   ;;  %s2745_s22 = sphi %s2837_s22, %s3310_s22   ;;  %s2741_s21 = sphi %s2835_s21, %s3309_s21  }
   0xb   : > { %p37_p0 = scmp.ge.s32.totalorder %s36_s27, 2  ;;  %s48_s28 = sadd.s32 1, %s2745_s22 }
   0xc   : > { %p55_p1 = scmp.ne.s32.totalorder %s2745_s22, %s2741_s21  ;;  %p56_p2 = scmp.eq.s32.totalorder %s2757_s25, 0 }
   0xd   : > { %s3314_s27 = smov (%p37_p0, %s36_s27), 0  ;;  %p2872_p4 = scmp.eq.s32.totalorder %s2166_s26, 1 }
   0xe   : > { %3291 = sst [smem:[#allocation18_spill]] %s3314_s27  ;;  %p2868_p3 = por %p56_p2, %p55_p1 }
   0xf   : > { %s3293_s30 = scalar_select %p2872_p4, 1, 0 }
  0x10   : > { %s44_s13 = ssub.s32 %s2753_s24, %s3314_s27  ;;  %p2168_p5 = scmp.ge.s32.totalorder %s2757_s25, 1 }
  0x11   : > { %3294 = sst [smem:[#allocation19_spill]] %s3293_s30  ;;  %p46_p6 = scmp.eq.s32.totalorder %s44_s13, 0 }
  0x12   : > { %p2881_p7 = por %p2872_p4, %p55_p1  ;;  %p351_p8 = scmp.lt.s32.totalorder %s2757_s25, 3 }
  0x13   : > { %s2887_s15 = scalar_select %p46_p6, %s2745_s22, %s48_s28  }
  0x14   : > { %s3295_s14 = scalar_select %p2881_p7, 1, 0 }
  0x15   : > { %3296 = sst [smem:[#allocation20_spill]] %s2887_s15  ;;  %p2889_p9 = pnand %p2168_p5, %p351_p8 }
  0x16   : > { %p2893_p10 = scmp.eq.s32.totalorder %s2166_s26, 0  ;;  %s2759_s18 = smov [#allocation5]  }
  0x17   : > { %p2401_p11 = pneg %p2889_p9  ;;  %s377_s19 = sshll.u32 %s2759_s18, 4  ;;  %s378_s19 = int_to_ptr.vmem [resolvable:$true] %s377_s19 }
  0x18   : > { %s3298_s17 = scalar_select %p2893_p10, 1, 0 }
  0x19   : > { %p2901_p12 = pnand %p2893_p10, %p2401_p11  ;;  %s2760_s28 = smov [#allocation8]  }
  0x1a   : > { %s390_s13 = sshll.u32 %s2760_s28, 4  ;;  %s2614_s26 = scalar_lea.vmem %s378_s19, 512  ;;  %s391_s13 = int_to_ptr.vmem [resolvable:$true] %s390_s13 }
  0x1b   : > { %p2605_p13 = pneg %p2901_p12  ;;  %p2615_p0 = scmp.ne.s32.totalorder %s378_s19, %s2614_s26 }
  0x1c   : > { %p2622_p5 = scmp.lt.s32.totalorder %s378_s19, %s378_s19  ;;  %p2623_p6 = scmp.lt.s32.totalorder %s2614_s26, %s2614_s26 }
  0x1d   : > { %p2617_p1 = pnand %p2615_p0, %p2605_p13 }
  0x1e   : > { %p2624_p8 = por %p2623_p6, %p2622_p5 }
  0x1f   : > { %p2618_p2 = pneg %p2617_p1 }
  0x21   : > { %p2625_p11 = pnand %p2624_p8, %p2618_p2 }
  0x23   : > { %2628 = shalt.err (!%p2625_p11)
}
  0x24   : > { %s2761_s18 = smov 128   ;;  %s2762_s27 = smov 8  }
  0x25   : > { %s3300_s3 = sld [smem:[#allocation21_spill]]  ;;  %s2640_s12 = scalar_lea.vmem %s391_s13, 512 }
  0x26   : > { %p2641_p4 = scmp.ne.s32.totalorder %s391_s13, %s2640_s12  ;;  %p2648_p7 = scmp.lt.s32.totalorder %s391_s13, %s391_s13 }
  0x27   : > { %p2649_p10 = scmp.lt.s32.totalorder %s2640_s12, %s2640_s12 }
  0x28   : > { %p2643_p0 = pnand %p2641_p4, %p2605_p13 }
  0x29   : > { %p2650_p5 = por %p2649_p10, %p2648_p7 }
  0x2a   : > { %p2644_p1 = pneg %p2643_p0 }
  0x2b   : > { %2404 = dma.hbm_to_vmem [thread:$0]  (!%p2901_p12), %s3300_s3, 512, %s378_s19, [#allocation6], %s2761_s18, %s2761_s18, %s2762_s27  }
  0x2c   : > { %p2651_p2 = pnand %p2650_p5, %p2644_p1 }
  0x2e   : > { %2654 = shalt.err (!%p2651_p2)
}
  0x2f   : > { %2407 = dma.hbm_to_vmem [thread:$0]  (!%p2901_p12), %s3272_s4, 512, %s391_s13, [#allocation9], %s2761_s18, %s2761_s18, %s2762_s27  }
  0x30   : > { %p2173_p6 = scmp.ge.s32.totalorder %s2757_s25, 2 }
  0x32   : > { %415 = sbr.rel (%p2173_p6) target bundleno = 60 (0x3c), region = 52 }
  0x37   : > { %418 = sbr.rel (!%p2868_p3) target bundleno = 60 (0x3c), region = 56  ;;  %s420_s15 = sand.u32 (%p2868_p3), 1, %s2745_s22  }
  0x38   : > { %s2175_s19 = sshll.u32 (%p2868_p3), %s2753_s24, 3  ;;  %s2174_s12 = sshll.u32 (%p2868_p3), %s420_s15, 4 }
  0x39   : > { %s427_s30 = scalar_lea.vmem (%p2868_p3), %s3268_s0, %s2175_s19  ;;  %s422_s20 = scalar_lea.vmem (%p2868_p3), [#allocation4], %s2174_s12 }
  0x3a   : > { %v458_v0 = vld [vmem:[%s427_s30] sm:$0xff] (%p2868_p3)  ;;  %v460_v1 = vld [vmem:[%s427_s30 + $0x10] sm:$0xff] (%p2868_p3) }
  0x3b   : > { %459 = vst [vmem:[%s422_s20] sm:$0xff] (%p2868_p3), %v458_v0  ;;  %461 = vst [vmem:[%s422_s20 + $0x8] sm:$0xff] (%p2868_p3), %v460_v1 }
  0x3c PF: > { %470 = sbr.rel (%p2889_p9) target bundleno = 6213 (0x1845), region = 94  ;;  %s473_s11 = sand.u32 (!%p2889_p9), 1, %s2741_s21  }
  0x3d   : > { %s2934_s27 = sshll.u32 (!%p2889_p9), %s473_s11, 4  ;;  %p3301_p3 = scmp.ne.s32.totalorder (!%p2889_p9), %s3298_s17, 0 }
  0x3e   : > { %s475_s29 = scalar_lea.vmem (!%p2889_p9), [#allocation4], %s2934_s27 }
  0x41   : > { %2724 = dma.done.wait (%p3301_p3), [#allocation6], 512  }
  0x42   : > { %2726 = vsyncadd (%p3301_p3), [#allocation6], 4294966784 }
  0x43   : > { %2728 = dma.done.wait (%p3301_p3), [#allocation9], 512  }
  0x44   : > { %2730 = vsyncadd (%p3301_p3), [#allocation9], 4294966784  ;;  %s2946_s3 = scalar_lea.vmem [#allocation10], %s2934_s27  ;;  %p2181_p4 = scmp.ne.s32.totalorder %s2749_s23, 0 }
  0x46   : > { %542 = sbr.rel (%p2181_p4) target bundleno = 78 (0x4e), region = 110 }
  0x4b   : > { %v543_v2 = vld [vmem:[%s3269_s1] sm:$0x3]  ;;  %vm544_vm0 = vcmask 254976  }
  0x4c   : > { %v546_v3 = vld [vmem:[%s3270_s2] sm:$0x3]  ;;  %545 = vst.msk [vmem:[#allocation11] sm:$0x3] %vm544_vm0, %v543_v2 }
  0x4d   : > { %547 = vst.msk [vmem:[#allocation12] sm:$0x3] %vm544_vm0, %v546_v3 }
  0x4e PF: > { %v557_v4 = vld [vmem:[#allocation5 + $0x18] sm:$0xf]  ;;  %vm572_vm1 = vcmask 1043456   ;;  %v556_v5 = vld [vmem:[#allocation5 + $0x10] sm:$0xff]  ;;  %v2763_v6 = vmov 0.0   ;;  %vm565_vm2 = vcmask 228352  }
  0x4f   : > { %2275 = vmatprep.subr.msk.mxu0 %vm572_vm1, %v557_v4  ;;  %2286 = vmatprep.subr.mxu1 %v2763_v6  ;;  %v552_v7 = vld [vmem:[%s475_s29] sm:$0xff]  ;;  %v2959_v8 = vld [vmem:[#allocation8 + $0x18] sm:$0xff]  ;;  %v555_v9 = vld [vmem:[#allocation5 + $0x8] sm:$0xff]  ;;  %vm657_vm3 = vcmask 261120   ;;  %vm2764_vm4 = vmmov 0   ;;  %s2765_s17 = smov 32  }
  0x50   : > { %2276 = vmatpush3.msk.msra.mxu0 %vm572_vm1, %v557_v4  ;;  %2283 = vmatprep.mubr.msk.f32.mxu0 %vm565_vm2, %v552_v7  ;;  %v2963_v10 = vld [vmem:[#allocation8 + $0x10] sm:$0xff]  ;;  %v554_v12 = vld [vmem:[#allocation5] sm:$0xff]  ;;  %v2967_v13 = vld [vmem:[#allocation8 + $0x8] sm:$0xff]  ;;  %s2766_s15 = smov 64   ;;  %vm798_vm5 = vcmask 1041409   ;;  %vm1761_vm6 = vcmask 1040384  }
  0x51   : > { %2277 = vmatprep.subr.mxu0 %v556_v5  ;;  %2287 = vmatpush3.msra.mxu1 %v2959_v8  ;;  %v553_v14 = vld [vmem:[%s475_s29 + $0x8] sm:$0xff]  ;;  %v2973_v15 = vld [vmem:[#allocation8] sm:$0xff]  ;;  %v2182_v18 = vld [vmem:[%s3273_s5] ss:$0 sm:$0xff]  ;;  %vm1764_vm7 = vcmask 1041408   ;;  %vm1767_vm8 = vcmask 1042432  }
  0x52   : > { %2278 = vmatpush3.msra.mxu0 %v556_v5  ;;  %2288 = vmatprep.subr.mxu1 %v2763_v6  ;;  %vm1772_vm9 = vcmask 1044480   ;;  %vm1775_vm10 = vcmask 1045504   ;;  %vm1778_vm11 = vcmask 1046528   ;;  %vm1892_vm12 = vcmask 97280   ;;  %s2767_s13 = smov 96   ;;  %p3302_p7 = scmp.ne.s32.totalorder %s3295_s14, 0 }
  0x53   : > { %2279 = vmatprep.subr.mxu0 %v555_v9  ;;  %2289 = vmatpush3.msra.mxu1 %v2963_v10  ;;  %v653_v17 = vld [vmem:[#allocation11] sm:$0x3]  ;;  %vm1786_vm13 = vcmask 254976   ;;  %s2216_s19 = sshll.u32 (%p3302_p7), %s2749_s23, 3 }
  0x54   : > { %v654_v11 = vld [vmem:[#allocation12] sm:$0x3]  ;;  %2280 = vmatpush3.msra.mxu0 %v555_v9  ;;  %2290 = vmatprep.subr.mxu1 %v2763_v6  ;;  %s1953_s20 = scalar_lea.vmem (%p3302_p7), %s3278_s10, %s2216_s19 }
  0x55   : > { %v752_v16 = vrot.slane %v654_v11, 1  ;;  %2281 = vmatprep.subr.mxu0 %v554_v12  ;;  %2291 = vmatpush3.msra.mxu1 %v2967_v13 }
  0x56   : > { %2282 = vmatpush3.msra.mxu0 %v554_v12  ;;  %2292 = vmatprep.subr.mxu1 %v2763_v6 }
  0x57   : > { %2284 = vmatmul.mubr.msk.f32.vlgmr.msra.gmra.mxu0 %vm565_vm2, %v553_v14  ;;  %2293 = vmatpush3.msra.mxu1 %v2973_v15 }
  0x58   : > { %2294 = vmatprep.mubr.msk.f32.mxu1 %vm2764_vm4, %v2763_v6  ;;  %755 = vrot.lane.b32.xlu1 %v752_v16, %s2765_s17 }
  0x59   : > { %2295 = vmatmul.mubr.msk.f32.vlgmr.msra.gmra.mxu1 %vm657_vm3, %v653_v17  ;;  %2297 = vmatprep.subr.mxu0 %v2763_v6 }
  0x5a   : > { %2298 = vmatpush3.msra.mxu0 %v2959_v8  ;;  %2305 = vmatprep.mubr.msk.f32.mxu0 %vm2764_vm4, %v2763_v6 }
  0x5b   : > { %2299 = vmatprep.subr.mxu0 %v2763_v6  ;;  %2308 = vmatprep.subr.mxu1 %v2763_v6 }
  0x5c   : > { %753 = vrot.lane.b32.xlu1 %v654_v11, %s2765_s17  ;;  %2300 = vmatpush3.msra.mxu0 %v2963_v10 }
  0x5d   : > { %2301 = vmatprep.subr.mxu0 %v2763_v6  ;;  %2309 = vmatpush3.msra.mxu1 %v2959_v8 }
  0x5e   : > { %2302 = vmatpush3.msra.mxu0 %v2967_v13  ;;  %2310 = vmatprep.subr.mxu1 %v2763_v6 }
  0x5f   : > { %2303 = vmatprep.subr.mxu0 %v2763_v6  ;;  %2311 = vmatpush3.msra.mxu1 %v2963_v10 }
  0x60   : > { %2304 = vmatpush3.msra.mxu0 %v2973_v15  ;;  %2312 = vmatprep.subr.mxu1 %v2763_v6 }
  0x61   : > { %2313 = vmatpush3.msra.mxu1 %v2967_v13  ;;  %2316 = vmatprep.mubr.msk.f32.mxu1 %vm2764_vm4, %v2763_v6 }
  0x62   : > { %2314 = vmatprep.subr.mxu1 %v2763_v6  ;;  %2319 = vmatprep.subr.mxu0 %v2763_v6 }
  0x63   : > { %2315 = vmatpush3.msra.mxu1 %v2973_v15 }
  0x64   : > { %2330 = vmatprep.subr.mxu1 %v2763_v6 }
  0xca   : > { %v756_v44 = vpop.permute.xlu1 %755 }
  0xce   : > { %v754_v46 = vpop.permute.xlu1 %753 }
 0x117   : > { %v2285_v19 = vpop.f32.mrf.mxu0 }
 0x118   : > { %v648_v20 = vadd.f32 %v2285_v19, %v2182_v18 }
 0x119   : > { %v642_v21 = vpop.f32.mrf.mxu0  ;;  %v727_v22 = vpop.f32.mrf.mxu1 }
 0x11a   : > { %652 = vst [vmem:[#allocation2 + $0x8] sm:$0xff] %v648_v20  ;;  %v643_v23 = vadd.f32 %v2182_v18, %v642_v21  ;;  %v732_v25 = vrot.slane %v727_v22, 1 }
 0x11b   : > { %v2296_v24 = vpop.f32.mrf.mxu1 }
 0x11c   : > { %651 = vst [vmem:[#allocation2] sm:$0xff] %v643_v23 }
 0x121   : > { %v656_v26 = vld [vmem:[#allocation2 + $0x8] sm:$0x1]  ;;  %v794_v1 = vld [vmem:[#allocation2 + $0x9] sm:$0x1] }
 0x122   : > { %v736_v27 = vadd.f32 %v732_v25, %v656_v26 }
 0x123   : > { %v655_v28 = vld [vmem:[#allocation2] sm:$0x1]  ;;  %v793_v61 = vld [vmem:[#allocation2 + $0x1] sm:$0x1] }
 0x124   : > { %v735_v29 = vadd.f32 %v727_v22, %v655_v28  ;;  %2467 = vtanh.f32 %v736_v27  ;;  %v2188_v32 = vmul.f32 -1.442695, %v736_v27 }
 0x126   : > { %2469 = vtanh.f32 %v735_v29  ;;  %v2187_v33 = vmul.f32 -1.442695, %v735_v29 }
 0x127   : > { %2471 = vpow2.f32 %v2188_v32 }
 0x128   : > { %2473 = vpow2.f32 %v2187_v33 }
 0x131   : > { %v2468_v30 = vpop.eup %2467 }
 0x132   : > { %765 = vrot.lane.b32.xlu0 %v2468_v30, %s2766_s15 }
 0x133   : > { %v2470_v31 = vpop.eup %2469 }
 0x134   : > { %v2472_v34 = vpop.eup %2471 }
 0x135   : > { %v744_v35 = vadd.f32 1.0, %v2472_v34  ;;  %v2474_v36 = vpop.eup %2473 }
 0x136   : > { %763 = vrot.lane.b32.xlu0 %v2470_v31, %s2766_s15  ;;  %v743_v37 = vadd.f32 1.0, %v2474_v36 }
 0x137   : > { %2475 = vrcp.f32 %v744_v35 }
 0x138   : > { %2477 = vrcp.f32 %v743_v37 }
 0x144   : > { %v2476_v38 = vpop.eup %2475 }
 0x145   : > { %v2478_v41 = vpop.eup %2477  ;;  %v760_v45 = vmul.f32 %v2476_v38, %v756_v44 }
 0x146   : > { %v759_v49 = vmul.f32 %v2478_v41, %v754_v46 }
 0x1a4   : > { %v766_v39 = vpop.permute.xlu0 %765 }
 0x1a5   : > { %v770_v40 = vmul.f32 %v2476_v38, %v766_v39 }
 0x1a7   : > { %775 = vrot.lane.b32.xlu0 %v770_v40, %s2765_s17 }
 0x1a8   : > { %v764_v42 = vpop.permute.xlu0 %763 }
 0x1a9   : > { %v769_v43 = vmul.f32 %v2478_v41, %v764_v42  ;;  %v929_v42 = vld [vmem:[#allocation2 + $0xa] sm:$0x1] }
 0x1ab   : > { %773 = vrot.lane.b32.xlu1 %v769_v43, %s2765_s17 }
 0x219   : > { %v776_v47 = vpop.permute.xlu0 %775 }
 0x21a   : > { %v3013_v48 = vadd.f32 %v776_v47, %v760_v45 }
 0x21c   : > { %2479 = vtanh.f32 %v3013_v48 }
 0x21d   : > { %v774_v50 = vpop.permute.xlu1 %773 }
 0x21e   : > { %v779_v51 = vadd.f32 %v774_v50, %v759_v49 }
 0x220   : > { %2481 = vtanh.f32 %v779_v51 }
 0x229   : > { %v2480_v52 = vpop.eup %2479 }
 0x22a   : > { %787 = vrot.lane.b32.xlu0 %v2480_v52, %s2766_s15 }
 0x22d   : > { %v2482_v53 = vpop.eup %2481 }
 0x22e   : > { %785 = vrot.lane.b32.xlu1 %v2482_v53, %s2766_s15 }
 0x29c   : > { %v788_v54 = vpop.permute.xlu0 %787 }
 0x29d   : > { %v3018_v55 = vmul.f32 %v2476_v38, %v788_v54  ;;  %v928_v38 = vld [vmem:[#allocation2 + $0x2] sm:$0x1] }
 0x29f   : > { %v797_v57 = vrot.slane %v3018_v55, 7 }
 0x2a0   : > { %v786_v56 = vpop.permute.xlu1 %785 }
 0x2a1   : > { %v3021_v58 = vmul.f32 %v2478_v41, %v786_v56 }
 0x2a3   : > { %v799_v59 = vsel %vm798_vm5, %v797_v57, %v3021_v58 }
 0x2a4   : > { %800 = vrot.lane.b32.xlu0 %v799_v59, %s2765_s17 }
 0x316   : > { %v801_v60 = vpop.permute.xlu0 %800 }
 0x317   : > { %2306 = vmatmul.mubr.msk.f32.vlgmr.msra.gmra.mxu0 %vm657_vm3, %v801_v60 }
 0x318   : > { %2320 = vmatpush3.msra.mxu0 %v2959_v8  ;;  %2327 = vmatprep.mubr.msk.f32.mxu0 %vm2764_vm4, %v2763_v6 }
 0x319   : > { %2321 = vmatprep.subr.mxu0 %v2763_v6 }
 0x31a   : > { %2322 = vmatpush3.msra.mxu0 %v2963_v10 }
 0x31b   : > { %2323 = vmatprep.subr.mxu0 %v2763_v6 }
 0x31c   : > { %2324 = vmatpush3.msra.mxu0 %v2967_v13 }
 0x31d   : > { %2325 = vmatprep.subr.mxu0 %v2763_v6 }
 0x31e   : > { %2326 = vmatpush3.msra.mxu0 %v2973_v15 }
 0x31f   : > { %2341 = vmatprep.subr.mxu0 %v2763_v6 }
 0x3d7   : > { %v870_v62 = vpop.f32.mrf.mxu0 }
 0x3d8   : > { %v875_v63 = vrot.slane %v870_v62, 1  ;;  %v878_v0 = vadd.f32 %v870_v62, %v793_v61 }
 0x3d9   : > { %v2307_v2 = vpop.f32.mrf.mxu0 }
 0x3da   : > { %v879_v3 = vadd.f32 %v875_v63, %v794_v1  ;;  %2483 = vtanh.f32 %v878_v0  ;;  %v2190_v7 = vmul.f32 -1.442695, %v878_v0 }
 0x3dc   : > { %2485 = vtanh.f32 %v879_v3  ;;  %v2191_v9 = vmul.f32 -1.442695, %v879_v3 }
 0x3dd   : > { %2487 = vpow2.f32 %v2190_v7 }
 0x3de   : > { %2489 = vpow2.f32 %v2191_v9 }
 0x3e7   : > { %v2484_v4 = vpop.eup %2483 }
 0x3e8   : > { %898 = vrot.lane.b32.xlu0 %v2484_v4, %s2766_s15 }
 0x3e9   : > { %v2486_v5 = vpop.eup %2485 }
 0x3ea   : > { %900 = vrot.lane.b32.xlu1 %v2486_v5, %s2766_s15  ;;  %v2488_v11 = vpop.eup %2487 }
 0x3eb   : > { %v2490_v12 = vpop.eup %2489  ;;  %v886_v14 = vadd.f32 1.0, %v2488_v11 }
 0x3ec   : > { %v887_v16 = vadd.f32 1.0, %v2490_v12 }
 0x3ed   : > { %2491 = vrcp.f32 %v886_v14 }
 0x3ee   : > { %2493 = vrcp.f32 %v887_v16 }
 0x3fa   : > { %v2492_v17 = vpop.eup %2491 }
 0x3fb   : > { %v2494_v20 = vpop.eup %2493  ;;  %v894_v23 = vmul.f32 %v2492_v17, %v779_v51 }
 0x3fc   : > { %v895_v26 = vmul.f32 %v2494_v20, %v3013_v48 }
 0x45a   : > { %v899_v18 = vpop.permute.xlu0 %898 }
 0x45b   : > { %v904_v19 = vmul.f32 %v2492_v17, %v899_v18 }
 0x45c   : > { %v901_v21 = vpop.permute.xlu1 %900 }
 0x45d   : > { %908 = vrot.lane.b32.xlu0 %v904_v19, %s2765_s17  ;;  %v905_v22 = vmul.f32 %v2494_v20, %v901_v21 }
 0x45f   : > { %910 = vrot.lane.b32.xlu1 %v905_v22, %s2765_s17 }
 0x4cf   : > { %v909_v24 = vpop.permute.xlu0 %908 }
 0x4d0   : > { %v914_v25 = vadd.f32 %v909_v24, %v894_v23 }
 0x4d1   : > { %v911_v27 = vpop.permute.xlu1 %910 }
 0x4d2   : > { %2495 = vtanh.f32 %v914_v25  ;;  %v915_v28 = vadd.f32 %v911_v27, %v895_v26  ;;  %v1063_v26 = vld [vmem:[#allocation2 + $0xb] sm:$0x1] }
 0x4d4   : > { %2497 = vtanh.f32 %v915_v28 }
 0x4df   : > { %v2496_v29 = vpop.eup %2495 }
 0x4e0   : > { %920 = vrot.lane.b32.xlu0 %v2496_v29, %s2766_s15 }
 0x4e1   : > { %v2498_v30 = vpop.eup %2497 }
 0x4e2   : > { %922 = vrot.lane.b32.xlu1 %v2498_v30, %s2766_s15 }
 0x552   : > { %v921_v31 = vpop.permute.xlu0 %920 }
 0x553   : > { %v3046_v34 = vmul.f32 %v2492_v17, %v921_v31 }
 0x554   : > { %v923_v32 = vpop.permute.xlu1 %922 }
 0x555   : > { %v3044_v33 = vmul.f32 %v2494_v20, %v923_v32  ;;  %v1732_v5 = vrot.slane %v3046_v34, 7 }
 0x557   : > { %v932_v35 = vrot.slane %v3044_v33, 7  ;;  %v1762_v14 = vsel %vm1761_vm6, %v3021_v58, %v1732_v5 }
 0x559   : > { %v933_v36 = vsel %vm798_vm5, %v932_v35, %v3046_v34  ;;  %v1763_v20 = vsel %vm1761_vm6, %v3018_v55, %v932_v35  ;;  %v1062_v55 = vld [vmem:[#allocation2 + $0x3] sm:$0x1] }
 0x55a   : > { %934 = vrot.lane.b32.xlu1 %v933_v36, %s2765_s17 }
 0x5cc   : > { %v935_v37 = vpop.permute.xlu1 %934 }
 0x5cd   : > { %2317 = vmatmul.mubr.msk.f32.vlgmr.msra.gmra.mxu1 %vm657_vm3, %v935_v37 }
 0x5ce   : > { %2331 = vmatpush3.msra.mxu1 %v2959_v8  ;;  %2338 = vmatprep.mubr.msk.f32.mxu1 %vm2764_vm4, %v2763_v6 }
 0x5cf   : > { %2332 = vmatprep.subr.mxu1 %v2763_v6 }
 0x5d0   : > { %2333 = vmatpush3.msra.mxu1 %v2963_v10 }
 0x5d1   : > { %2334 = vmatprep.subr.mxu1 %v2763_v6 }
 0x5d2   : > { %2335 = vmatpush3.msra.mxu1 %v2967_v13 }
 0x5d3   : > { %2336 = vmatprep.subr.mxu1 %v2763_v6 }
 0x5d4   : > { %2337 = vmatpush3.msra.mxu1 %v2973_v15 }
 0x5d5   : > { %2352 = vmatprep.subr.mxu1 %v2763_v6 }
 0x68d   : > { %v1004_v39 = vpop.f32.mrf.mxu1 }
 0x68e   : > { %v1009_v40 = vrot.slane %v1004_v39, 1  ;;  %v1012_v41 = vadd.f32 %v1004_v39, %v928_v38 }
 0x68f   : > { %v2318_v43 = vpop.f32.mrf.mxu1 }
 0x690   : > { %v1013_v44 = vadd.f32 %v1009_v40, %v929_v42  ;;  %2499 = vtanh.f32 %v1012_v41  ;;  %v2193_v47 = vmul.f32 -1.442695, %v1012_v41 }
 0x692   : > { %2501 = vtanh.f32 %v1013_v44  ;;  %v2194_v48 = vmul.f32 -1.442695, %v1013_v44 }
 0x693   : > { %2503 = vpow2.f32 %v2193_v47 }
 0x694   : > { %2505 = vpow2.f32 %v2194_v48 }
 0x69d   : > { %v2500_v45 = vpop.eup %2499 }
 0x69e   : > { %1032 = vrot.lane.b32.xlu1 %v2500_v45, %s2766_s15 }
 0x69f   : > { %v2502_v46 = vpop.eup %2501 }
 0x6a0   : > { %1034 = vrot.lane.b32.xlu0 %v2502_v46, %s2766_s15  ;;  %v2504_v49 = vpop.eup %2503 }
 0x6a1   : > { %v2506_v50 = vpop.eup %2505  ;;  %v1020_v51 = vadd.f32 1.0, %v2504_v49 }
 0x6a2   : > { %v1021_v52 = vadd.f32 1.0, %v2506_v50 }
 0x6a3   : > { %2507 = vrcp.f32 %v1020_v51 }
 0x6a4   : > { %2509 = vrcp.f32 %v1021_v52 }
 0x6b0   : > { %v2508_v53 = vpop.eup %2507 }
 0x6b1   : > { %v2510_v57 = vpop.eup %2509  ;;  %v1028_v61 = vmul.f32 %v2508_v53, %v914_v25 }
 0x6b2   : > { %v1029_v0 = vmul.f32 %v2510_v57, %v915_v28 }
 0x710   : > { %v1033_v54 = vpop.permute.xlu1 %1032 }
 0x711   : > { %v1038_v56 = vmul.f32 %v2508_v53, %v1033_v54 }
 0x712   : > { %v1035_v59 = vpop.permute.xlu0 %1034 }
 0x713   : > { %1042 = vrot.lane.b32.xlu1 %v1038_v56, %s2765_s17  ;;  %v1039_v60 = vmul.f32 %v2510_v57, %v1035_v59 }
 0x715   : > { %1044 = vrot.lane.b32.xlu0 %v1039_v60, %s2765_s17 }
 0x785   : > { %v1043_v62 = vpop.permute.xlu1 %1042 }
 0x786   : > { %v3069_v63 = vadd.f32 %v1043_v62, %v1028_v61 }
 0x787   : > { %v1045_v1 = vpop.permute.xlu0 %1044 }
 0x788   : > { %2511 = vtanh.f32 %v3069_v63  ;;  %v3072_v2 = vadd.f32 %v1045_v1, %v1029_v0  ;;  %v1196_v0 = vld [vmem:[#allocation2 + $0x4] sm:$0x1] }
 0x78a   : > { %2513 = vtanh.f32 %v3072_v2 }
 0x795   : > { %v2512_v3 = vpop.eup %2511 }
 0x796   : > { %1054 = vrot.lane.b32.xlu1 %v2512_v3, %s2766_s15 }
 0x797   : > { %v2514_v4 = vpop.eup %2513 }
 0x798   : > { %1056 = vrot.lane.b32.xlu0 %v2514_v4, %s2766_s15  ;;  %v1197_v4 = vld [vmem:[#allocation2 + $0xc] sm:$0x1] }
 0x808   : > { %v1055_v7 = vpop.permute.xlu1 %1054 }
 0x809   : > { %v1060_v9 = vmul.f32 %v2508_v53, %v1055_v7 }
 0x80a   : > { %v1057_v12 = vpop.permute.xlu0 %1056 }
 0x80b   : > { %v1735_v11 = vrot.slane %v1060_v9, 6  ;;  %v1061_v16 = vmul.f32 %v2510_v57, %v1057_v12 }
 0x80d   : > { %v3079_v17 = vsel %vm1764_vm7, %v1762_v14, %v1735_v11  ;;  %v1066_v18 = vrot.slane %v1061_v16, 7  ;;  %v1736_v19 = vrot.slane %v1061_v16, 6 }
 0x80f   : > { %v3084_v21 = vsel %vm1764_vm7, %v1763_v20, %v1736_v19  ;;  %v1067_v22 = vsel %vm798_vm5, %v1066_v18, %v1060_v9 }
 0x810   : > { %1068 = vrot.lane.b32.xlu0 %v1067_v22, %s2765_s17 }
 0x882   : > { %v1069_v23 = vpop.permute.xlu0 %1068 }
 0x883   : > { %2328 = vmatmul.mubr.msk.f32.vlgmr.msra.gmra.mxu0 %vm657_vm3, %v1069_v23 }
 0x884   : > { %2342 = vmatpush3.msra.mxu0 %v2959_v8  ;;  %2349 = vmatprep.mubr.msk.f32.mxu0 %vm2764_vm4, %v2763_v6 }
 0x885   : > { %2343 = vmatprep.subr.mxu0 %v2763_v6 }
 0x886   : > { %2344 = vmatpush3.msra.mxu0 %v2963_v10 }
 0x887   : > { %2345 = vmatprep.subr.mxu0 %v2763_v6 }
 0x888   : > { %2346 = vmatpush3.msra.mxu0 %v2967_v13 }
 0x889   : > { %2347 = vmatprep.subr.mxu0 %v2763_v6 }
 0x88a   : > { %2348 = vmatpush3.msra.mxu0 %v2973_v15 }
 0x88b   : > { %2363 = vmatprep.subr.mxu0 %v2763_v6 }
 0x943   : > { %v1138_v58 = vpop.f32.mrf.mxu0 }
 0x944   : > { %v1143_v24 = vrot.slane %v1138_v58, 1  ;;  %v1146_v25 = vadd.f32 %v1138_v58, %v1062_v55 }
 0x945   : > { %v2329_v27 = vpop.f32.mrf.mxu0 }
 0x946   : > { %v1147_v28 = vadd.f32 %v1143_v24, %v1063_v26  ;;  %2515 = vtanh.f32 %v1146_v25  ;;  %v2196_v31 = vmul.f32 -1.442695, %v1146_v25 }
 0x948   : > { %2517 = vtanh.f32 %v1147_v28  ;;  %v2197_v32 = vmul.f32 -1.442695, %v1147_v28 }
 0x949   : > { %2519 = vpow2.f32 %v2196_v31 }
 0x94a   : > { %2521 = vpow2.f32 %v2197_v32 }
 0x953   : > { %v2516_v29 = vpop.eup %2515 }
 0x954   : > { %1166 = vrot.lane.b32.xlu0 %v2516_v29, %s2766_s15 }
 0x955   : > { %v2518_v30 = vpop.eup %2517 }
 0x956   : > { %1168 = vrot.lane.b32.xlu1 %v2518_v30, %s2766_s15  ;;  %v2520_v33 = vpop.eup %2519 }
 0x957   : > { %v2522_v34 = vpop.eup %2521  ;;  %v1154_v35 = vadd.f32 1.0, %v2520_v33 }
 0x958   : > { %v1155_v36 = vadd.f32 1.0, %v2522_v34 }
 0x959   : > { %2523 = vrcp.f32 %v1154_v35 }
 0x95a   : > { %2525 = vrcp.f32 %v1155_v36 }
 0x966   : > { %v2524_v37 = vpop.eup %2523 }
 0x967   : > { %v2526_v40 = vpop.eup %2525  ;;  %v1162_v43 = vmul.f32 %v2524_v37, %v3069_v63 }
 0x968   : > { %v1163_v46 = vmul.f32 %v2526_v40, %v3072_v2 }
 0x9c6   : > { %v1167_v38 = vpop.permute.xlu0 %1166 }
 0x9c7   : > { %v1172_v39 = vmul.f32 %v2524_v37, %v1167_v38 }
 0x9c8   : > { %v1169_v41 = vpop.permute.xlu1 %1168 }
 0x9c9   : > { %1176 = vrot.lane.b32.xlu0 %v1172_v39, %s2765_s17  ;;  %v1173_v42 = vmul.f32 %v2526_v40, %v1169_v41 }
 0x9cb   : > { %1178 = vrot.lane.b32.xlu1 %v1173_v42, %s2765_s17 }
 0xa3b   : > { %v1177_v44 = vpop.permute.xlu0 %1176 }
 0xa3c   : > { %v3104_v45 = vadd.f32 %v1177_v44, %v1162_v43  ;;  %v1330_v43 = vld [vmem:[#allocation2 + $0x5] sm:$0x1] }
 0xa3d   : > { %v1179_v47 = vpop.permute.xlu1 %1178 }
 0xa3e   : > { %2527 = vtanh.f32 %v3104_v45  ;;  %v1183_v48 = vadd.f32 %v1179_v47, %v1163_v46 }
 0xa40   : > { %2529 = vtanh.f32 %v1183_v48 }
 0xa4b   : > { %v2528_v49 = vpop.eup %2527 }
 0xa4c   : > { %1188 = vrot.lane.b32.xlu0 %v2528_v49, %s2766_s15 }
 0xa4d   : > { %v2530_v50 = vpop.eup %2529 }
 0xa4e   : > { %1190 = vrot.lane.b32.xlu1 %v2530_v50, %s2766_s15 }
 0xabe   : > { %v1189_v51 = vpop.permute.xlu0 %1188 }
 0xabf   : > { %v1194_v52 = vmul.f32 %v2524_v37, %v1189_v51 }
 0xac0   : > { %v1191_v54 = vpop.permute.xlu1 %1190 }
 0xac1   : > { %v1739_v53 = vrot.slane %v1194_v52, 5  ;;  %v1195_v56 = vmul.f32 %v2526_v40, %v1191_v54 }
 0xac3   : > { %v3111_v57 = vsel %vm1767_vm8, %v3079_v17, %v1739_v53  ;;  %v1200_v59 = vrot.slane %v1195_v56, 7  ;;  %v1740_v60 = vrot.slane %v1195_v56, 5 }
 0xac5   : > { %v3114_v61 = vsel %vm1767_vm8, %v3084_v21, %v1740_v60  ;;  %v1201_v62 = vsel %vm798_vm5, %v1200_v59, %v1194_v52 }
 0xac6   : > { %1202 = vrot.lane.b32.xlu1 %v1201_v62, %s2765_s17 }
 0xb38   : > { %v1203_v63 = vpop.permute.xlu1 %1202 }
 0xb39   : > { %2339 = vmatmul.mubr.msk.f32.vlgmr.msra.gmra.mxu1 %vm657_vm3, %v1203_v63 }
 0xb3a   : > { %2353 = vmatpush3.msra.mxu1 %v2959_v8  ;;  %2360 = vmatprep.mubr.msk.f32.mxu1 %vm2764_vm4, %v2763_v6 }
 0xb3b   : > { %2354 = vmatprep.subr.mxu1 %v2763_v6 }
 0xb3c   : > { %2355 = vmatpush3.msra.mxu1 %v2963_v10 }
 0xb3d   : > { %2356 = vmatprep.subr.mxu1 %v2763_v6 }
 0xb3e   : > { %2357 = vmatpush3.msra.mxu1 %v2967_v13 }
 0xb3f   : > { %2358 = vmatprep.subr.mxu1 %v2763_v6 }
 0xb40   : > { %2359 = vmatpush3.msra.mxu1 %v2973_v15 }
 0xbf9   : > { %v1272_v1 = vpop.f32.mrf.mxu1 }
 0xbfa   : > { %v1277_v2 = vrot.slane %v1272_v1, 1  ;;  %v1280_v3 = vadd.f32 %v1272_v1, %v1196_v0 }
 0xbfb   : > { %v2340_v5 = vpop.f32.mrf.mxu1 }
 0xbfc   : > { %v1281_v7 = vadd.f32 %v1277_v2, %v1197_v4  ;;  %2531 = vtanh.f32 %v1280_v3  ;;  %v2199_v12 = vmul.f32 -1.442695, %v1280_v3 }
 0xbfe   : > { %2533 = vtanh.f32 %v1281_v7  ;;  %v2200_v14 = vmul.f32 -1.442695, %v1281_v7 }
 0xbff   : > { %2535 = vpow2.f32 %v2199_v12 }
 0xc00   : > { %2537 = vpow2.f32 %v2200_v14 }
 0xc09   : > { %v2532_v9 = vpop.eup %2531 }
 0xc0a   : > { %1300 = vrot.lane.b32.xlu1 %v2532_v9, %s2766_s15 }
 0xc0b   : > { %v2534_v11 = vpop.eup %2533 }
 0xc0c   : > { %1302 = vrot.lane.b32.xlu0 %v2534_v11, %s2766_s15  ;;  %v2536_v16 = vpop.eup %2535 }
 0xc0d   : > { %v2538_v17 = vpop.eup %2537  ;;  %v1288_v18 = vadd.f32 1.0, %v2536_v16 }
 0xc0e   : > { %v1289_v19 = vadd.f32 1.0, %v2538_v17 }
 0xc0f   : > { %2539 = vrcp.f32 %v1288_v18 }
 0xc10   : > { %2541 = vrcp.f32 %v1289_v19 }
 0xc1c   : > { %v2540_v20 = vpop.eup %2539 }
 0xc1d   : > { %v2542_v23 = vpop.eup %2541  ;;  %v1296_v24 = vmul.f32 %v2540_v20, %v3104_v45 }
 0xc1e   : > { %v1297_v27 = vmul.f32 %v2542_v23, %v1183_v48 }
 0xc7c   : > { %v1301_v21 = vpop.permute.xlu1 %1300 }
 0xc7d   : > { %v1306_v22 = vmul.f32 %v2540_v20, %v1301_v21  ;;  %v1464_v21 = vld [vmem:[#allocation2 + $0x6] sm:$0x1] }
 0xc7e   : > { %v1303_v55 = vpop.permute.xlu0 %1302 }
 0xc7f   : > { %1310 = vrot.lane.b32.xlu1 %v1306_v22, %s2765_s17  ;;  %v1307_v58 = vmul.f32 %v2542_v23, %v1303_v55 }
 0xc81   : > { %1312 = vrot.lane.b32.xlu0 %v1307_v58, %s2765_s17  ;;  %v1465_v58 = vld [vmem:[#allocation2 + $0xe] sm:$0x1] }
 0xcf1   : > { %v1311_v25 = vpop.permute.xlu1 %1310 }
 0xcf2   : > { %v1316_v26 = vadd.f32 %v1311_v25, %v1296_v24 }
 0xcf3   : > { %v1313_v28 = vpop.permute.xlu0 %1312 }
 0xcf4   : > { %2543 = vtanh.f32 %v1316_v26  ;;  %v1317_v29 = vadd.f32 %v1313_v28, %v1297_v27 }
 0xcf6   : > { %2545 = vtanh.f32 %v1317_v29 }
 0xd01   : > { %v2544_v30 = vpop.eup %2543 }
 0xd02   : > { %1322 = vrot.lane.b32.xlu1 %v2544_v30, %s2766_s15 }
 0xd03   : > { %v2546_v31 = vpop.eup %2545 }
 0xd04   : > { %1324 = vrot.lane.b32.xlu0 %v2546_v31, %s2766_s15 }
 0xd74   : > { %v1323_v32 = vpop.permute.xlu1 %1322 }
 0xd75   : > { %v1328_v33 = vmul.f32 %v2540_v20, %v1323_v32 }
 0xd76   : > { %v1325_v35 = vpop.permute.xlu0 %1324 }
 0xd77   : > { %v1743_v34 = vrot.slane %v1328_v33, 4  ;;  %v1329_v36 = vmul.f32 %v2542_v23, %v1325_v35 }
 0xd79   : > { %v3137_v37 = vsel %vm572_vm1, %v3111_v57, %v1743_v34  ;;  %v1334_v38 = vrot.slane %v1329_v36, 7  ;;  %v1744_v39 = vrot.slane %v1329_v36, 4 }
 0xd7b   : > { %v3141_v40 = vsel %vm572_vm1, %v3114_v61, %v1744_v39  ;;  %v1335_v41 = vsel %vm798_vm5, %v1334_v38, %v1328_v33 }
 0xd7c   : > { %1336 = vrot.lane.b32.xlu0 %v1335_v41, %s2765_s17 }
 0xdee   : > { %v1337_v42 = vpop.permute.xlu0 %1336 }
 0xdef   : > { %2350 = vmatmul.mubr.msk.f32.vlgmr.msra.gmra.mxu0 %vm657_vm3, %v1337_v42 }
 0xdf0   : > { %2364 = vmatpush3.msra.mxu0 %v2959_v8  ;;  %2371 = vmatprep.mubr.msk.f32.mxu0 %vm2764_vm4, %v2763_v6  ;;  %v1331_v8 = vld [vmem:[#allocation2 + $0xd] sm:$0x1] }
 0xdf1   : > { %2365 = vmatprep.subr.mxu0 %v2763_v6 }
 0xdf2   : > { %2366 = vmatpush3.msra.mxu0 %v2963_v10 }
 0xdf3   : > { %2367 = vmatprep.subr.mxu0 %v2763_v6 }
 0xdf4   : > { %2368 = vmatpush3.msra.mxu0 %v2967_v13 }
 0xdf5   : > { %2369 = vmatprep.subr.mxu0 %v2763_v6 }
 0xdf6   : > { %2370 = vmatpush3.msra.mxu0 %v2973_v15 }
 0xeaf   : > { %v1406_v44 = vpop.f32.mrf.mxu0 }
 0xeb0   : > { %v1411_v45 = vrot.slane %v1406_v44, 1  ;;  %v1414_v46 = vadd.f32 %v1406_v44, %v1330_v43 }
 0xeb1   : > { %v2351_v47 = vpop.f32.mrf.mxu0 }
 0xeb2   : > { %v1415_v48 = vadd.f32 %v1411_v45, %v1331_v8  ;;  %2547 = vtanh.f32 %v1414_v46  ;;  %v2202_v13 = vmul.f32 -1.442695, %v1414_v46 }
 0xeb4   : > { %2549 = vtanh.f32 %v1415_v48  ;;  %v2203_v50 = vmul.f32 -1.442695, %v1415_v48 }
 0xeb5   : > { %2551 = vpow2.f32 %v2202_v13 }
 0xeb6   : > { %2553 = vpow2.f32 %v2203_v50 }
 0xebf   : > { %v2548_v49 = vpop.eup %2547 }
 0xec0   : > { %1434 = vrot.lane.b32.xlu0 %v2548_v49, %s2766_s15 }
 0xec1   : > { %v2550_v10 = vpop.eup %2549 }
 0xec2   : > { %1436 = vrot.lane.b32.xlu1 %v2550_v10, %s2766_s15  ;;  %v2552_v6 = vpop.eup %2551 }
 0xec3   : > { %v2554_v15 = vpop.eup %2553  ;;  %v1422_v51 = vadd.f32 1.0, %v2552_v6 }
 0xec4   : > { %v1423_v52 = vadd.f32 1.0, %v2554_v15 }
 0xec5   : > { %2555 = vrcp.f32 %v1422_v51 }
 0xec6   : > { %2557 = vrcp.f32 %v1423_v52 }
 0xed2   : > { %v2556_v53 = vpop.eup %2555 }
 0xed3   : > { %v2558_v57 = vpop.eup %2557  ;;  %v1430_v61 = vmul.f32 %v2556_v53, %v1316_v26 }
 0xed4   : > { %v1431_v0 = vmul.f32 %v2558_v57, %v1317_v29 }
 0xf32   : > { %v1435_v54 = vpop.permute.xlu0 %1434 }
 0xf33   : > { %v1440_v56 = vmul.f32 %v2556_v53, %v1435_v54  ;;  %v1598_v54 = vld [vmem:[#allocation2 + $0x7] sm:$0x1] }
 0xf34   : > { %v1437_v59 = vpop.permute.xlu1 %1436 }
 0xf35   : > { %1444 = vrot.lane.b32.xlu0 %v1440_v56, %s2765_s17  ;;  %v1441_v60 = vmul.f32 %v2558_v57, %v1437_v59 }
 0xf37   : > { %1446 = vrot.lane.b32.xlu1 %v1441_v60, %s2765_s17  ;;  %v1599_v60 = vld [vmem:[#allocation2 + $0xf] sm:$0x1] }
 0xfa7   : > { %v1445_v62 = vpop.permute.xlu0 %1444 }
 0xfa8   : > { %v1450_v63 = vadd.f32 %v1445_v62, %v1430_v61 }
 0xfa9   : > { %v1447_v1 = vpop.permute.xlu1 %1446 }
 0xfaa   : > { %2559 = vtanh.f32 %v1450_v63  ;;  %v1451_v2 = vadd.f32 %v1447_v1, %v1431_v0 }
 0xfac   : > { %2561 = vtanh.f32 %v1451_v2 }
 0xfb7   : > { %v2560_v3 = vpop.eup %2559 }
 0xfb8   : > { %1456 = vrot.lane.b32.xlu0 %v2560_v3, %s2766_s15 }
 0xfb9   : > { %v2562_v4 = vpop.eup %2561 }
 0xfba   : > { %1458 = vrot.lane.b32.xlu1 %v2562_v4, %s2766_s15 }
0x102a   : > { %v1457_v5 = vpop.permute.xlu0 %1456 }
0x102b   : > { %v1462_v7 = vmul.f32 %v2556_v53, %v1457_v5 }
0x102c   : > { %v1459_v11 = vpop.permute.xlu1 %1458 }
0x102d   : > { %v1747_v9 = vrot.slane %v1462_v7, 3  ;;  %v1463_v12 = vmul.f32 %v2558_v57, %v1459_v11 }
0x102f   : > { %v1773_v14 = vsel %vm1772_vm9, %v3137_v37, %v1747_v9  ;;  %v1468_v16 = vrot.slane %v1463_v12, 7  ;;  %v1748_v17 = vrot.slane %v1463_v12, 3 }
0x1031   : > { %v1469_v18 = vsel %vm798_vm5, %v1468_v16, %v1462_v7  ;;  %v1774_v19 = vsel %vm1772_vm9, %v3141_v40, %v1748_v17 }
0x1032   : > { %1470 = vrot.lane.b32.xlu1 %v1469_v18, %s2765_s17 }
0x10a4   : > { %v1471_v20 = vpop.permute.xlu1 %1470 }
0x10a5   : > { %2361 = vmatmul.mubr.msk.f32.vlgmr.msra.gmra.mxu1 %vm657_vm3, %v1471_v20 }
0x1165   : > { %v1540_v22 = vpop.f32.mrf.mxu1 }
0x1166   : > { %v1545_v23 = vrot.slane %v1540_v22, 1  ;;  %v1548_v55 = vadd.f32 %v1540_v22, %v1464_v21 }
0x1167   : > { %v2362_v24 = vpop.f32.mrf.mxu1 }
0x1168   : > { %v1549_v25 = vadd.f32 %v1545_v23, %v1465_v58  ;;  %2563 = vtanh.f32 %v1548_v55  ;;  %v2205_v28 = vmul.f32 -1.442695, %v1548_v55  ;;  %v1799_v24 = vld [vmem:[%s3274_s6 + $0x18] sm:$0xff] }
0x1169   : > { %2374 = vmatprep.subr.mxu1 %v1799_v24 }
0x116a   : > { %2565 = vtanh.f32 %v1549_v25  ;;  %v2206_v29 = vmul.f32 -1.442695, %v1549_v25  ;;  %v1798_v25 = vld [vmem:[%s3274_s6 + $0x10] sm:$0xff]  ;;  %2375 = vmatpush3.msra.mxu1 %v1799_v24 }
0x116b   : > { %2567 = vpow2.f32 %v2205_v28  ;;  %2376 = vmatprep.subr.mxu1 %v1798_v25 }
0x116c   : > { %2569 = vpow2.f32 %v2206_v29  ;;  %2377 = vmatpush3.msra.mxu1 %v1798_v25  ;;  %v1796_v29 = vld [vmem:[%s3274_s6] sm:$0xff] }
0x1175   : > { %v2564_v26 = vpop.eup %2563 }
0x1176   : > { %1568 = vrot.lane.b32.xlu1 %v2564_v26, %s2766_s15  ;;  %v1797_v26 = vld [vmem:[%s3274_s6 + $0x8] sm:$0xff] }
0x1177   : > { %v2566_v27 = vpop.eup %2565  ;;  %2378 = vmatprep.subr.mxu1 %v1797_v26 }
0x1178   : > { %1570 = vrot.lane.b32.xlu0 %v2566_v27, %s2766_s15  ;;  %v2568_v30 = vpop.eup %2567  ;;  %2379 = vmatpush3.msra.mxu1 %v1797_v26 }
0x1179   : > { %v2570_v31 = vpop.eup %2569  ;;  %v1556_v32 = vadd.f32 1.0, %v2568_v30  ;;  %2380 = vmatprep.subr.mxu1 %v1796_v29 }
0x117a   : > { %v1557_v33 = vadd.f32 1.0, %v2570_v31  ;;  %2381 = vmatpush3.msra.mxu1 %v1796_v29 }
0x117b   : > { %2571 = vrcp.f32 %v1556_v32 }
0x117c   : > { %2573 = vrcp.f32 %v1557_v33 }
0x1188   : > { %v2572_v34 = vpop.eup %2571 }
0x1189   : > { %v2574_v37 = vpop.eup %2573  ;;  %v1564_v40 = vmul.f32 %v2572_v34, %v1450_v63 }
0x118a   : > { %v1565_v43 = vmul.f32 %v2574_v37, %v1451_v2 }
0x11e8   : > { %v1569_v35 = vpop.permute.xlu1 %1568 }
0x11e9   : > { %v1574_v36 = vmul.f32 %v2572_v34, %v1569_v35 }
0x11ea   : > { %v1571_v38 = vpop.permute.xlu0 %1570 }
0x11eb   : > { %1578 = vrot.lane.b32.xlu1 %v1574_v36, %s2765_s17  ;;  %v1575_v39 = vmul.f32 %v2574_v37, %v1571_v38 }
0x11ed   : > { %1580 = vrot.lane.b32.xlu0 %v1575_v39, %s2765_s17 }
0x125d   : > { %v1579_v41 = vpop.permute.xlu1 %1578 }
0x125e   : > { %v1584_v42 = vadd.f32 %v1579_v41, %v1564_v40 }
0x125f   : > { %v1581_v44 = vpop.permute.xlu0 %1580 }
0x1260   : > { %2575 = vtanh.f32 %v1584_v42  ;;  %v1585_v45 = vadd.f32 %v1581_v44, %v1565_v43 }
0x1262   : > { %2577 = vtanh.f32 %v1585_v45 }
0x126d   : > { %v2576_v46 = vpop.eup %2575 }
0x126e   : > { %1590 = vrot.lane.b32.xlu1 %v2576_v46, %s2766_s15 }
0x126f   : > { %v2578_v8 = vpop.eup %2577 }
0x1270   : > { %1592 = vrot.lane.b32.xlu0 %v2578_v8, %s2766_s15 }
0x12e0   : > { %v1591_v47 = vpop.permute.xlu1 %1590 }
0x12e1   : > { %v1596_v48 = vmul.f32 %v2572_v34, %v1591_v47 }
0x12e2   : > { %v1593_v10 = vpop.permute.xlu0 %1592 }
0x12e3   : > { %v1751_v49 = vrot.slane %v1596_v48, 2  ;;  %v1597_v13 = vmul.f32 %v2574_v37, %v1593_v10 }
0x12e5   : > { %v3172_v50 = vsel %vm1775_vm10, %v1773_v14, %v1751_v49  ;;  %v1602_v6 = vrot.slane %v1597_v13, 7  ;;  %v1752_v15 = vrot.slane %v1597_v13, 2 }
0x12e7   : > { %v1603_v51 = vsel %vm798_vm5, %v1602_v6, %v1596_v48  ;;  %v3175_v52 = vsel %vm1775_vm10, %v1774_v19, %v1752_v15 }
0x12e8   : > { %1604 = vrot.lane.b32.xlu0 %v1603_v51, %s2765_s17 }
0x135a   : > { %v1605_v53 = vpop.permute.xlu0 %1604 }
0x135b   : > { %2372 = vmatmul.mubr.msk.f32.vlgmr.msra.gmra.mxu0 %vm657_vm3, %v1605_v53 }
0x141b   : > { %v1674_v56 = vpop.f32.mrf.mxu0 }
0x141c   : > { %v1679_v57 = vrot.slane %v1674_v56, 1  ;;  %v1682_v59 = vadd.f32 %v1674_v56, %v1598_v54 }
0x141d   : > { %v2373_v61 = vpop.f32.mrf.mxu0 }
0x141e   : > { %v1683_v62 = vadd.f32 %v1679_v57, %v1599_v60  ;;  %2579 = vtanh.f32 %v1682_v59  ;;  %v2208_v1 = vmul.f32 -1.442695, %v1682_v59 }
0x1420   : > { %2581 = vtanh.f32 %v1683_v62  ;;  %v2209_v2 = vmul.f32 -1.442695, %v1683_v62 }
0x1421   : > { %2583 = vpow2.f32 %v2208_v1  ;;  %v2213_v1 = vld [vmem:[%s3276_s8] ss:$0 sm:$0xff] }
0x1422   : > { %2585 = vpow2.f32 %v2209_v2 }
0x142b   : > { %v2580_v63 = vpop.eup %2579 }
0x142c   : > { %1702 = vrot.lane.b32.xlu1 %v2580_v63, %s2766_s15 }
0x142d   : > { %v2582_v0 = vpop.eup %2581 }
0x142e   : > { %1704 = vrot.lane.b32.xlu0 %v2582_v0, %s2766_s15  ;;  %v2584_v3 = vpop.eup %2583 }
0x142f   : > { %v2586_v4 = vpop.eup %2585  ;;  %v1690_v5 = vadd.f32 1.0, %v2584_v3 }
0x1430   : > { %v1691_v7 = vadd.f32 1.0, %v2586_v4  ;;  %v2214_v4 = vld [vmem:[%s3277_s9] ss:$0 sm:$0xff] }
0x1431   : > { %2587 = vrcp.f32 %v1690_v5 }
0x1432   : > { %2589 = vrcp.f32 %v1691_v7 }
0x143e   : > { %v2588_v9 = vpop.eup %2587 }
0x143f   : > { %v2590_v14 = vpop.eup %2589  ;;  %v1698_v18 = vmul.f32 %v2588_v9, %v1584_v42  ;;  %v2210_v42 = vld [vmem:[%s3275_s7] ss:$0 sm:$0xff] }
0x1440   : > { %v1699_v21 = vmul.f32 %v2590_v14, %v1585_v45 }
0x149e   : > { %v1703_v11 = vpop.permute.xlu1 %1702 }
0x149f   : > { %v1708_v12 = vmul.f32 %v2588_v9, %v1703_v11 }
0x14a0   : > { %v1705_v16 = vpop.permute.xlu0 %1704 }
0x14a1   : > { %1712 = vrot.lane.b32.xlu1 %v1708_v12, %s2765_s17  ;;  %v1709_v17 = vmul.f32 %v2590_v14, %v1705_v16 }
0x14a3   : > { %1714 = vrot.lane.b32.xlu0 %v1709_v17, %s2765_s17 }
0x1513   : > { %v1713_v19 = vpop.permute.xlu1 %1712 }
0x1514   : > { %v1718_v20 = vadd.f32 %v1713_v19, %v1698_v18 }
0x1515   : > { %v1715_v22 = vpop.permute.xlu0 %1714 }
0x1516   : > { %2591 = vtanh.f32 %v1718_v20  ;;  %v1719_v23 = vadd.f32 %v1715_v22, %v1699_v21 }
0x1518   : > { %2593 = vtanh.f32 %v1719_v23  ;;  %v1790_v55 = vrot.slane %v1719_v23, 7 }
0x151a   : > { %v1791_v58 = vsel %vm798_vm5, %v1790_v55, %v1718_v20 }
0x1523   : > { %v2592_v27 = vpop.eup %2591 }
0x1524   : > { %1724 = vrot.lane.b32.xlu1 %v2592_v27, %s2766_s15 }
0x1525   : > { %v2594_v28 = vpop.eup %2593 }
0x1526   : > { %1726 = vrot.lane.b32.xlu0 %v2594_v28, %s2766_s15 }
0x1596   : > { %v1725_v30 = vpop.permute.xlu1 %1724 }
0x1597   : > { %v1730_v31 = vmul.f32 %v2588_v9, %v1725_v30 }
0x1598   : > { %v1727_v33 = vpop.permute.xlu0 %1726 }
0x1599   : > { %v1757_v32 = vrot.slane %v1730_v31, 1  ;;  %v1731_v34 = vmul.f32 %v2590_v14, %v1727_v33 }
0x159b   : > { %v1779_v35 = vsel %vm1778_vm11, %v3172_v50, %v1757_v32  ;;  %v1758_v36 = vrot.slane %v1731_v34, 1  ;;  %v1781_v37 = vrot.slane %v1731_v34, 7 }
0x159c   : > { %1809 = vrot.lane.b32.xlu1 %v1779_v35, %s2765_s17 }
0x159d   : > { %v1780_v38 = vsel %vm1778_vm11, %v3175_v52, %v1758_v36  ;;  %v1782_v39 = vsel %vm798_vm5, %v1781_v37, %v1730_v31 }
0x159e   : > { %1811 = vrot.lane.b32.xlu0 %v1780_v38, %s2765_s17 }
0x160e   : > { %v1810_v40 = vpop.permute.xlu1 %1809 }
0x160f   : > { %2382 = vmatprep.mubr.msk.f32.mxu1 %vm657_vm3, %v1810_v40 }
0x1610   : > { %v1812_v41 = vpop.permute.xlu0 %1811 }
0x1611   : > { %2383 = vmatmul.mubr.msk.f32.vlgmr.msra.gmra.mxu1 %vm657_vm3, %v1812_v41 }
0x16d1   : > { %v2384_v43 = vpop.f32.mrf.mxu1 }
0x16d2   : > { %v1889_v44 = vadd.f32 %v2384_v43, %v2210_v42 }
0x16d3   : > { %v1883_v45 = vpop.f32.mrf.mxu1 }
0x16d4   : > { %v1884_v46 = vadd.f32 %v2210_v42, %v1883_v45  ;;  %v1896_v8 = vsel %vm1892_vm12, %v1889_v44, 0.0 }
0x16d5   : > { %1897 = vadd.xlane.f32.xlu0 %v1896_v8 }
0x16d6   : > { %v1893_v47 = vsel %vm1892_vm12, %v1884_v46, 0.0 }
0x16d7   : > { %1894 = vadd.xlane.f32.xlu1 %v1893_v47 }
0x175e   : > { %v1898_v48 = vpop.xlane.xlu0 %1897 }
0x175f   : > { %v1901_v49 = vmul.f32 0.083333336, %v1898_v48 }
0x1760   : > { %v1895_v10 = vpop.xlane.xlu1 %1894 }
0x1761   : > { %v1903_v13 = vsub.f32 %v1889_v44, %v1901_v49  ;;  %v1900_v50 = vmul.f32 0.083333336, %v1895_v10 }
0x1763   : > { %v1902_v6 = vsub.f32 %v1884_v46, %v1900_v50  ;;  %v1905_v15 = vmul.f32 %v1903_v13, %v1903_v13 }
0x1765   : > { %v1909_v51 = vsel %vm1892_vm12, %v1905_v15, 0.0  ;;  %v1904_v52 = vmul.f32 %v1902_v6, %v1902_v6 }
0x1766   : > { %1910 = vadd.xlane.f32.xlu1 %v1909_v51 }
0x1767   : > { %v1906_v53 = vsel %vm1892_vm12, %v1904_v52, 0.0 }
0x1768   : > { %1907 = vadd.xlane.f32.xlu0 %v1906_v53 }
0x1777   : > { %1792 = vrot.lane.b32.xlu1 %v1791_v58, %s2767_s13 }
0x177e   : > { %1783 = vrot.lane.b32.xlu0 %v1782_v39, %s2765_s17 }
0x17ef   : > { %v1911_v54 = vpop.xlane.xlu1 %1910 }
0x17f0   : > { %v1913_v56 = vmul.f32 0.083333336, %v1911_v54 }
0x17f1   : > { %v1908_v57 = vpop.xlane.xlu0 %1907 }
0x17f2   : > { %v1915_v59 = vadd.f32 1e-05, %v1913_v56  ;;  %v1912_v60 = vmul.f32 0.083333336, %v1908_v57 }
0x17f3   : > { %v1793_v61 = vpop.permute.xlu1 %1792 }
0x17f4   : > { %2595 = vrsqrt.f32 %v1915_v59  ;;  %v1914_v62 = vadd.f32 1e-05, %v1912_v60  ;;  %1795 = vst.msk [vmem:[#allocation12] sm:$0x3] %vm1786_vm13, %v1793_v61 }
0x17f5   : > { %v1784_v63 = vpop.permute.xlu0 %1783 }
0x17f6   : > { %2597 = vrsqrt.f32 %v1914_v62  ;;  %1787 = vst.msk [vmem:[#allocation11] sm:$0x3] %vm1786_vm13, %v1784_v63 }
0x1801   : > { %v2596_v0 = vpop.eup %2595 }
0x1802   : > { %v1919_v2 = vmul.f32 %v2596_v0, %v1903_v13 }
0x1803   : > { %v2598_v3 = vpop.eup %2597 }
0x1804   : > { %v1928_v5 = vmul.f32 %v2213_v1, %v1919_v2  ;;  %v1918_v7 = vmul.f32 %v2598_v3, %v1902_v6 }
0x1806   : > { %v1937_v9 = vadd.f32 %v2214_v4, %v1928_v5  ;;  %v1927_v11 = vmul.f32 %v2213_v1, %v1918_v7 }
0x1808   : > { %2599 = vtanh.f32 %v1937_v9  ;;  %v1936_v12 = vadd.f32 %v2214_v4, %v1927_v11 }
0x180a   : > { %2601 = vtanh.f32 %v1936_v12 }
0x1814   : > { %1948 = sbr.rel (!%p3302_p7) target bundleno = 6177 (0x1821), region = 114 }
0x1815   : > { %v2600_v14 = vpop.eup %2599 }
0x1816   : > { %1941 = vst.msk [vmem:[%s2946_s3 + $0x8] sm:$0xff] %vm1892_vm12, %v2600_v14 }
0x1817   : > { %v2602_v16 = vpop.eup %2601 }
0x1818   : > { %1940 = vst.msk [vmem:[%s2946_s3] sm:$0xff] %vm1892_vm12, %v2602_v16 }
0x181d   : > { %v1986_v18 = vld [vmem:[%s2946_s3 + $0x8] sm:$0xff] }
0x181e   : > { %1987 = vst [vmem:[%s1953_s20 + $0x10] sm:$0xff] %v1986_v18 }
0x181f   : > { %v1984_v17 = vld [vmem:[%s2946_s3] sm:$0xff] }
0x1820   : > { %1985 = vst [vmem:[%s1953_s20] sm:$0xff] %v1984_v17 }
0x1821 PF: > { %s2768_s11 = smov [#allocation11]   ;;  %s3303_s27 = sld [smem:[#allocation19_spill]] }
0x1822   : > { %s2000_s29 = sshll.u32 %s2768_s11, 4  ;;  %s2769_s21 = smov [#allocation12]   ;;  %s2001_s29 = int_to_ptr.vmem [resolvable:$true] %s2000_s29 }
0x1823   : > { %s2013_s14 = sshll.u32 %s2769_s21, 4  ;;  %s2655_s30 = scalar_lea.vmem %s2001_s29, 32  ;;  %s2014_s14 = int_to_ptr.vmem [resolvable:$true] %s2013_s14 }
0x1824   : > { %p2656_p9 = scmp.ne.s32.totalorder %s2001_s29, %s2655_s30  ;;  %p2662_p8 = scmp.lt.s32.totalorder %s2001_s29, %s2001_s29 }
0x1825   : > { %p2663_p11 = scmp.lt.s32.totalorder %s2655_s30, %s2655_s30 }
0x1827   : > { %p3304_p10 = scmp.ne.s32.totalorder %s3303_s27, 0  ;;  %p2664_p0 = por %p2663_p11, %p2662_p8 }
0x1829   : > { %p2657_p12 = pnand %p2656_p9, %p3304_p10 }
0x182b   : > { %p2658_p13 = pneg %p2657_p12 }
0x182d   : > { %p2665_p1 = pnand %p2664_p0, %p2658_p13 }
0x182f   : > { %2668 = shalt.err (!%p2665_p1)
}
0x1830   : > { %s3305_s16 = sld [smem:[#allocation22_spill]]  ;;  %s2679_s13 = scalar_lea.vmem %s2014_s14, 32 }
0x1831   : > { %p2680_p5 = scmp.ne.s32.totalorder %s2014_s14, %s2679_s13  ;;  %p2686_p3 = scmp.lt.s32.totalorder %s2014_s14, %s2014_s14 }
0x1832   : > { %p2687_p4 = scmp.lt.s32.totalorder %s2679_s13, %s2679_s13 }
0x1833   : > { %p2681_p2 = pnand %p2680_p5, %p3304_p10 }
0x1834   : > { %p2688_p7 = por %p2687_p4, %p2686_p3 }
0x1835   : > { %p2682_p6 = pneg %p2681_p2 }
0x1836   : > { %2394 = dma.vmem_to_hbm [thread:$0]  (%p3304_p10), %s2001_s29, 32, %s3305_s16, [#allocation7]  }
0x1837   : > { %p2689_p9 = pnand %p2688_p7, %p2682_p6 }
0x1839   : > { %2692 = shalt.err (!%p2689_p9)
}
0x183a   : > { %s3306_s17 = sld [smem:[#allocation23_spill]] }
0x1840   : > { %2396 = dma.vmem_to_hbm [thread:$0]  (%p3304_p10), %s2014_s14, 32, %s3306_s17, [#allocation13]  }
0x1841   : > { %2732 = dma.done.wait (%p3304_p10), [#allocation7], 32  }
0x1842   : > { %2734 = vsyncadd (%p3304_p10), [#allocation7], 4294967264 }
0x1843   : > { %2736 = dma.done.wait (%p3304_p10), [#allocation13], 32  }
0x1844   : > { %2738 = vsyncadd (%p3304_p10), [#allocation13], 4294967264 }
0x1845 PF: > { %s27_s25 = sadd.s32 1, %s2757_s25   ;;  %s3307_s15 = sld [smem:[#allocation20_spill]] }
0x1846   : > { %p24_p12 = scmp.ge.s32.totalorder %s27_s25, 4   ;;  %s3308_s19 = sld [smem:[#allocation18_spill]] }
0x1847   : > { %s3309_s21 = smov %s2745_s22  ;;  %s3311_s23 = smov %s2753_s24 }
0x1848   :  { %26 = sbr.rel (!%p24_p12) target bundleno = 10 (0xa), region = 209 }
0x184b   : > { %s3310_s22 = smov %s3307_s15 }
0x184c   : > { %s3312_s24 = smov %s3308_s19 }
0x184d   :  { %2037 = vsyncpa [#allocation6], 1 }
0x184e   :  { %2039 = vsyncpa [#allocation6 + $0x1], 1 }
0x184f   :  { %2040 = vsyncpa [#allocation9], 1 }
0x1850   :  { %2041 = vsyncpa [#allocation7], 1 }
0x1851   :  { %2043 = vsyncpa [#allocation7 + $0x1], 1 }
0x1852   :  { %2044 = vsyncpa [#allocation13], 1 }

</bundles_post_ra>
